<compile_context>
chip_gen: v6e
topology: v6e:2x2x1
jax: 0.10.0
libtpu: 0.0.40
codegen_flags: <defaults>
</compile_context>

<pallas_src>
import functools
import math

import jax
import jax.numpy as jnp
import numpy as np
from jax.experimental import pallas as pl
from jax.experimental.pallas import tpu as pltpu


# ----------------------------------------------------------------------------
# Kernel: offset conv (stride == kernel width => per-patch matmul) +
#         deformable conv (bilinear sampling folded into one gather matmul,
#         with the projection weights pre-folded into the gathered operand Z)
# ----------------------------------------------------------------------------
def deform_embed_kernel(x_ref, xp_ref, woff_ref, boff_ref, wdef_ref, bdef_ref,
                        out_ref, gbig_ref, z_ref, *, K, L, B):
    L_out = L // K

    # Hoisted iotas / parameter loads (shared across batches and taps).
    lane = jax.lax.broadcasted_iota(jnp.int32, (L_out, L), 1)        # [L_out, L]
    base = jax.lax.broadcasted_iota(jnp.int32, (L_out, 1), 0).astype(
        jnp.float32) * float(K)                                       # p * K
    woff = woff_ref[...]                                              # [K*c_in, 2K]
    boff = boff_ref[...]                                              # [1, 2K]
    bdef = bdef_ref[...]                                              # [1, d]

    # B merged into one invocation: static unroll over batches (B is small).
    for b in range(B):
        x = x_ref[b]                                                  # [L, c_in]
        xp = xp_ref[b]                                                # [L_out, K*c_in]

        # ---- offset conv: per-patch matmul, kept in f32 (drives control math)
        offsets = jnp.dot(xp, woff,
                          preferred_element_type=jnp.float32) + boff  # [L_out, 2K]

        for j in range(K):
            # Fold wdef into the gather: Z_j = x @ wdef[j]  -> [L, d]
            z_ref[b, j * L:(j + 1) * L, :] = jnp.dot(
                x, wdef_ref[j], preferred_element_type=jnp.float32)

            # ---- bilinear sampling weights for tap j (all f32, VPU) --------
            dy = offsets[:, 2 * j: 2 * j + 1]                         # [L_out, 1]
            dx = offsets[:, 2 * j + 1: 2 * j + 2]                     # [L_out, 1]

            # vertical direction: the torch view has H == 1, only row 0 exists
            y_low = jnp.floor(dy)
            ly = dy - y_low
            wy = (jnp.where(y_low == 0.0, 1.0 - ly, 0.0)
                  + jnp.where(y_low == -1.0, ly, 0.0))
            wy = jnp.where((dy > -1.0) & (dy < 1.0), wy, 0.0)

            # horizontal (sequence) direction
            px = base + float(j) + dx                                 # sampling coord
            valid = (px > -1.0) & (px < float(L))
            x_low = jnp.floor(px)
            lx = px - x_low
            xli = x_low.astype(jnp.int32)
            w_lo = jnp.where((xli >= 0) & valid, 1.0 - lx, 0.0) * wy
            w_hi = jnp.where((xli + 1 <= L - 1) & valid, lx, 0.0) * wy

            # weighted one-hot block for tap j, lane width L only; written to
            # its own static column slice of the Gbig scratch.
            gbig_ref[b, :, j * L:(j + 1) * L] = (
                jnp.where(lane == xli, w_lo, 0.0)
                + jnp.where(lane == xli + 1, w_hi, 0.0))

        # ---- single 128-deep gather matmul (output width d), f32 accumulation
        out_ref[b] = jnp.dot(gbig_ref[b], z_ref[b],
                             preferred_element_type=jnp.float32) + bdef


def deformable_token_embedding(x, woff, boff, wdef, bdef, *, K):
    """x: [B, L, c_in] -> [B, L//K, d_model]."""
    B, L, c_in = x.shape
    L_out = L // K
    d = wdef.shape[1]

    # Free XLA views (no data inflation): contiguous K-patches for the offset
    # conv, and per-tap projection weights for the folded gather.
    xp = x.reshape(B, L_out, K * c_in)       # xp[b,p,j*c_in+c] = x[b, p*K+j, c]
    wdef3 = wdef.reshape(K, c_in, d)         # wdef3[j] = wdef[j*c_in:(j+1)*c_in]

    kernel = functools.partial(deform_embed_kernel, K=K, L=L, B=B)
    vmem_spec = lambda: pl.BlockSpec(memory_space=pltpu.MemorySpace.VMEM)

    # Single invocation (no grid): whole-array VMEM refs, both batches inside.
    # At production L, tile the gather along the K*L axis (and set
    # vmem_limit_bytes) so Gbig/Z fit v7x's 64 MiB VMEM.
    return pl.pallas_call(
        kernel,
        out_shape=jax.ShapeDtypeStruct((B, L_out, d), jnp.float32),
        in_specs=[vmem_spec() for _ in range(6)],
        out_specs=vmem_spec(),
        scratch_shapes=[
            pltpu.VMEM((B, L_out, K * L), jnp.float32),   # Gbig (gather matrix)
            pltpu.VMEM((B, K * L, d), jnp.float32),       # Z = per-tap x @ wdef_j
        ],
    )(x, xp, woff, boff, wdef3, bdef)


# ----------------------------------------------------------------------------
# Pure-JAX f32 reference (torchvision deform_conv2d semantics, H == 1)
# ----------------------------------------------------------------------------
def reference_deform_embedding(x, woff, boff, wdef, bdef, *, K):
    B, L, c_in = x.shape
    L_out = L // K
    d = wdef.shape[1]
    xp = x.reshape(B, L_out, K * c_in)
    offsets = jnp.einsum("bpf,fo->bpo", xp, woff) + boff[0]
    base = jnp.arange(L_out, dtype=jnp.float32) * K
    acc = jnp.zeros((B, L_out, d), jnp.float32)
    for j in range(K):
        dy = offsets[..., 2 * j]
        dx = offsets[..., 2 * j + 1]
        y_low = jnp.floor(dy)
        ly = dy - y_low
        wy = (jnp.where(y_low == 0.0, 1.0 - ly, 0.0)
              + jnp.where(y_low == -1.0, ly, 0.0))
        wy = jnp.where((dy > -1.0) & (dy < 1.0), wy, 0.0)
        px = base[None, :] + float(j) + dx
        valid = (px > -1.0) & (px < float(L))
        xl = jnp.floor(px)
        lx = px - xl
        xli = xl.astype(jnp.int32)
        w_lo = jnp.where((xli >= 0) & valid, 1.0 - lx, 0.0) * wy
        w_hi = jnp.where((xli + 1 <= L - 1) & valid, lx, 0.0) * wy
        g_lo = jnp.take_along_axis(x, jnp.clip(xli, 0, L - 1)[..., None], axis=1)
        g_hi = jnp.take_along_axis(x, jnp.clip(xli + 1, 0, L - 1)[..., None],
                                   axis=1)
        sample = w_lo[..., None] * g_lo + w_hi[..., None] * g_hi
        acc = acc + jnp.einsum("bpc,cd->bpd", sample,
                               wdef[j * c_in:(j + 1) * c_in])
    return acc + bdef[0]


# ----------------------------------------------------------------------------
if __name__ == "__main__":
    cycle_length = 4          # K: kernel size == stride along L
    num_patches = 8           # L_out
    c_in = 3
    d_model = 32
    B = 2
    L = cycle_length * num_patches      # 32
    K = cycle_length

    key = jax.random.PRNGKey(0)
    k1, k2, k3, k4, kx = jax.random.split(key, 5)
    fan_in = c_in * K
    gain = math.sqrt(2.0 / (1.0 + 0.01 ** 2))   # kaiming_normal_, leaky_relu

    # conv weights pre-flattened: [kw*c_in, out_ch] (kw-major)
    woff = jax.random.normal(k1, (K * c_in, 2 * K), jnp.float32) \
        * (gain / math.sqrt(fan_in))
    boff = (jax.random.uniform(k2, (1, 2 * K), jnp.float32) * 2.0 - 1.0) \
        / math.sqrt(fan_in)
    wdef = jax.random.normal(k3, (K * c_in, d_model), jnp.float32) \
        * (gain / math.sqrt(fan_in))
    bdef = (jax.random.uniform(k4, (1, d_model), jnp.float32) * 2.0 - 1.0) \
        / math.sqrt(fan_in)
    x = jax.random.normal(kx, (B, L, c_in), jnp.float32)

    fwd = jax.jit(functools.partial(deformable_token_embedding, K=K))
    out = jax.block_until_ready(fwd(x, woff, boff, wdef, bdef))

    assert out.shape == (B, num_patches, d_model)
    assert bool(jnp.all(jnp.isfinite(out)))

    ref = reference_deform_embedding(x, woff, boff, wdef, bdef, K=K)
    # tolerance accounts for MXU default-precision differences between the
    # in-kernel dots and the XLA reference einsums (operands all kept f32)
    np.testing.assert_allclose(np.asarray(out), np.asarray(ref),
                               rtol=2e-2, atol=5e-2)

    print("KERNEL_OK")
</pallas_src>

<mosaic_0001>
module attributes {stable_mosaic.version = 11 : i64} {
  func.func @deform_embed_kernel(%arg0: memref<2x32x3xf32, #tpu.memory_space<vmem>>, %arg1: memref<2x8x12xf32, #tpu.memory_space<vmem>>, %arg2: memref<12x8xf32, #tpu.memory_space<vmem>>, %arg3: memref<1x8xf32, #tpu.memory_space<vmem>>, %arg4: memref<4x3x32xf32, #tpu.memory_space<vmem>>, %arg5: memref<1x32xf32, #tpu.memory_space<vmem>>, %arg6: memref<2x8x32xf32, #tpu.memory_space<vmem>>, %arg7: memref<2x8x128xf32, #tpu.memory_space<vmem>>, %arg8: memref<2x128x32xf32, #tpu.memory_space<vmem>>) attributes {dimension_semantics = [], scalar_prefetch = 0 : i64, scratch_operands = 2 : i64, tpu.core_type = #tpu.core_type<tc>} {
    %0 = tpu.iota {dimensions = array<i32: 1>} : vector<8x32xi32>
    %1 = tpu.iota {dimensions = array<i32: 0>} : vector<8x1xi32>
    %2 = arith.sitofp %1 : vector<8x1xi32> to vector<8x1xf32>
    %cst = arith.constant 4.000000e+00 : f32
    %3 = vector.broadcast %cst : f32 to vector<8x1xf32>
    %4 = arith.mulf %2, %3 : vector<8x1xf32>
    %c0 = arith.constant 0 : index
    %c0_0 = arith.constant 0 : index
    %5 = vector.load %arg2[%c0, %c0_0] : memref<12x8xf32, #tpu.memory_space<vmem>>, vector<12x8xf32>
    %c0_1 = arith.constant 0 : index
    %c0_2 = arith.constant 0 : index
    %6 = vector.load %arg3[%c0_1, %c0_2] : memref<1x8xf32, #tpu.memory_space<vmem>>, vector<1x8xf32>
    %c0_3 = arith.constant 0 : index
    %c0_4 = arith.constant 0 : index
    %7 = vector.load %arg5[%c0_3, %c0_4] : memref<1x32xf32, #tpu.memory_space<vmem>>, vector<1x32xf32>
    %c0_5 = arith.constant 0 : index
    %c0_6 = arith.constant 0 : index
    %c0_7 = arith.constant 0 : index
    %8 = vector.load %arg0[%c0_5, %c0_6, %c0_7] : memref<2x32x3xf32, #tpu.memory_space<vmem>>, vector<1x32x3xf32>
    %9 = vector.shape_cast %8 : vector<1x32x3xf32> to vector<32x3xf32>
    %c0_8 = arith.constant 0 : index
    %c0_9 = arith.constant 0 : index
    %c0_10 = arith.constant 0 : index
    %10 = vector.load %arg1[%c0_8, %c0_9, %c0_10] : memref<2x8x12xf32, #tpu.memory_space<vmem>>, vector<1x8x12xf32>
    %11 = vector.shape_cast %10 : vector<1x8x12xf32> to vector<8x12xf32>
    %cst_11 = arith.constant dense<0.000000e+00> : vector<8x8xf32>
    %12 = tpu.matmul %11, %5, %cst_11 {dimension_numbers = #tpu.dot_dimension_numbers<[1], [0], [0], [1], [0, 0, 1, 1], [], []>} : vector<8x12xf32>, vector<12x8xf32>, vector<8x8xf32> -> vector<8x8xf32>
    %13 = vector.broadcast %6 : vector<1x8xf32> to vector<8x8xf32>
    %14 = arith.addf %12, %13 : vector<8x8xf32>
    %c0_12 = arith.constant 0 : index
    %c0_13 = arith.constant 0 : index
    %c0_14 = arith.constant 0 : index
    %15 = vector.load %arg4[%c0_12, %c0_13, %c0_14] : memref<4x3x32xf32, #tpu.memory_space<vmem>>, vector<1x3x32xf32>
    %16 = vector.shape_cast %15 : vector<1x3x32xf32> to vector<3x32xf32>
    %cst_15 = arith.constant dense<0.000000e+00> : vector<32x32xf32>
    %17 = tpu.matmul %9, %16, %cst_15 {dimension_numbers = #tpu.dot_dimension_numbers<[1], [0], [0], [1], [0, 0, 1, 1], [], []>} : vector<32x3xf32>, vector<3x32xf32>, vector<32x32xf32> -> vector<32x32xf32>
    %c0_16 = arith.constant 0 : index
    %c0_17 = arith.constant 0 : index
    %c0_18 = arith.constant 0 : index
    %18 = vector.load %arg8[%c0_16, %c0_17, %c0_18] : memref<2x128x32xf32, #tpu.memory_space<vmem>>, vector<1x32x32xf32>
    %19 = vector.shape_cast %18 : vector<1x32x32xf32> to vector<32x32xf32>
    %20 = vector.shape_cast %17 : vector<32x32xf32> to vector<1x32x32xf32>
    tpu.vector_store %arg8[%c0_16, %c0_17, %c0_18], %20 {strides = array<i32>} : memref<2x128x32xf32, #tpu.memory_space<vmem>>, vector<1x32x32xf32>,
    %21 = vector.extract_strided_slice %14 {offsets = [0, 0], sizes = [8, 1], strides = [1, 1]} : vector<8x8xf32> to vector<8x1xf32>
    %22 = vector.extract_strided_slice %14 {offsets = [0, 1], sizes = [8, 1], strides = [1, 1]} : vector<8x8xf32> to vector<8x1xf32>
    %23 = math.floor %21 : vector<8x1xf32>
    %24 = arith.subf %21, %23 : vector<8x1xf32>
    %cst_19 = arith.constant 0.000000e+00 : f32
    %25 = vector.broadcast %cst_19 : f32 to vector<8x1xf32>
    %26 = arith.cmpf oeq, %23, %25 : vector<8x1xf32>
    %cst_20 = arith.constant 1.000000e+00 : f32
    %27 = vector.broadcast %cst_20 : f32 to vector<8x1xf32>
    %28 = arith.subf %27, %24 : vector<8x1xf32>
    %cst_21 = arith.constant 0.000000e+00 : f32
    %29 = vector.broadcast %cst_21 : f32 to vector<8x1xf32>
    %30 = arith.select %26, %28, %29 : vector<8x1xi1>, vector<8x1xf32>
    %cst_22 = arith.constant -1.000000e+00 : f32
    %31 = vector.broadcast %cst_22 : f32 to vector<8x1xf32>
    %32 = arith.cmpf oeq, %23, %31 : vector<8x1xf32>
    %cst_23 = arith.constant 0.000000e+00 : f32
    %33 = vector.broadcast %cst_23 : f32 to vector<8x1xf32>
    %34 = arith.select %32, %24, %33 : vector<8x1xi1>, vector<8x1xf32>
    %35 = arith.addf %30, %34 : vector<8x1xf32>
    %cst_24 = arith.constant -1.000000e+00 : f32
    %36 = vector.broadcast %cst_24 : f32 to vector<8x1xf32>
    %37 = arith.cmpf ogt, %21, %36 : vector<8x1xf32>
    %cst_25 = arith.constant 1.000000e+00 : f32
    %38 = vector.broadcast %cst_25 : f32 to vector<8x1xf32>
    %39 = arith.cmpf olt, %21, %38 : vector<8x1xf32>
    %40 = arith.andi %37, %39 : vector<8x1xi1>
    %cst_26 = arith.constant 0.000000e+00 : f32
    %41 = vector.broadcast %cst_26 : f32 to vector<8x1xf32>
    %42 = arith.select %40, %35, %41 : vector<8x1xi1>, vector<8x1xf32>
    %cst_27 = arith.constant 0.000000e+00 : f32
    %43 = vector.broadcast %cst_27 : f32 to vector<8x1xf32>
    %44 = arith.addf %4, %43 : vector<8x1xf32>
    %45 = arith.addf %44, %22 : vector<8x1xf32>
    %cst_28 = arith.constant -1.000000e+00 : f32
    %46 = vector.broadcast %cst_28 : f32 to vector<8x1xf32>
    %47 = arith.cmpf ogt, %45, %46 : vector<8x1xf32>
    %cst_29 = arith.constant 3.200000e+01 : f32
    %48 = vector.broadcast %cst_29 : f32 to vector<8x1xf32>
    %49 = arith.cmpf olt, %45, %48 : vector<8x1xf32>
    %50 = arith.andi %47, %49 : vector<8x1xi1>
    %51 = math.floor %45 : vector<8x1xf32>
    %52 = arith.subf %45, %51 : vector<8x1xf32>
    %53 = arith.fptosi %51 : vector<8x1xf32> to vector<8x1xi32>
    %c0_i32 = arith.constant 0 : i32
    %54 = vector.broadcast %c0_i32 : i32 to vector<8x1xi32>
    %55 = arith.cmpi sge, %53, %54 : vector<8x1xi32>
    %56 = arith.andi %55, %50 : vector<8x1xi1>
    %cst_30 = arith.constant 1.000000e+00 : f32
    %57 = vector.broadcast %cst_30 : f32 to vector<8x1xf32>
    %58 = arith.subf %57, %52 : vector<8x1xf32>
    %cst_31 = arith.constant 0.000000e+00 : f32
    %59 = vector.broadcast %cst_31 : f32 to vector<8x1xf32>
    %60 = arith.select %56, %58, %59 : vector<8x1xi1>, vector<8x1xf32>
    %61 = arith.mulf %60, %42 : vector<8x1xf32>
    %c1_i32 = arith.constant 1 : i32
    %62 = vector.broadcast %c1_i32 : i32 to vector<8x1xi32>
    %63 = arith.addi %53, %62 : vector<8x1xi32>
    %c31_i32 = arith.constant 31 : i32
    %64 = vector.broadcast %c31_i32 : i32 to vector<8x1xi32>
    %65 = arith.cmpi sle, %63, %64 : vector<8x1xi32>
    %66 = arith.andi %65, %50 : vector<8x1xi1>
    %cst_32 = arith.constant 0.000000e+00 : f32
    %67 = vector.broadcast %cst_32 : f32 to vector<8x1xf32>
    %68 = arith.select %66, %52, %67 : vector<8x1xi1>, vector<8x1xf32>
    %69 = arith.mulf %68, %42 : vector<8x1xf32>
    %70 = vector.broadcast %53 : vector<8x1xi32> to vector<8x32xi32>
    %71 = arith.cmpi eq, %0, %70 : vector<8x32xi32>
    %cst_33 = arith.constant 0.000000e+00 : f32
    %72 = vector.shape_cast %61 : vector<8x1xf32> to vector<8x1xf32>
    %73 = vector.broadcast %72 : vector<8x1xf32> to vector<8x32xf32>
    %74 = vector.broadcast %cst_33 : f32 to vector<8x32xf32>
    %75 = arith.select %71, %73, %74 : vector<8x32xi1>, vector<8x32xf32>
    %c1_i32_34 = arith.constant 1 : i32
    %76 = vector.broadcast %c1_i32_34 : i32 to vector<8x1xi32>
    %77 = arith.addi %53, %76 : vector<8x1xi32>
    %78 = vector.broadcast %77 : vector<8x1xi32> to vector<8x32xi32>
    %79 = arith.cmpi eq, %0, %78 : vector<8x32xi32>
    %cst_35 = arith.constant 0.000000e+00 : f32
    %80 = vector.shape_cast %69 : vector<8x1xf32> to vector<8x1xf32>
    %81 = vector.broadcast %80 : vector<8x1xf32> to vector<8x32xf32>
    %82 = vector.broadcast %cst_35 : f32 to vector<8x32xf32>
    %83 = arith.select %79, %81, %82 : vector<8x32xi1>, vector<8x32xf32>
    %84 = arith.addf %75, %83 : vector<8x32xf32>
    %c0_36 = arith.constant 0 : index
    %c0_37 = arith.constant 0 : index
    %c0_38 = arith.constant 0 : index
    %85 = vector.load %arg7[%c0_36, %c0_37, %c0_38] : memref<2x8x128xf32, #tpu.memory_space<vmem>>, vector<1x8x32xf32>
    %86 = vector.shape_cast %85 : vector<1x8x32xf32> to vector<8x32xf32>
    %87 = vector.shape_cast %84 : vector<8x32xf32> to vector<1x8x32xf32>
    tpu.vector_store %arg7[%c0_36, %c0_37, %c0_38], %87 {strides = array<i32>} : memref<2x8x128xf32, #tpu.memory_space<vmem>>, vector<1x8x32xf32>,
    %c1 = arith.constant 1 : index
    %c0_39 = arith.constant 0 : index
    %c0_40 = arith.constant 0 : index
    %88 = vector.load %arg4[%c1, %c0_39, %c0_40] : memref<4x3x32xf32, #tpu.memory_space<vmem>>, vector<1x3x32xf32>
    %89 = vector.shape_cast %88 : vector<1x3x32xf32> to vector<3x32xf32>
    %cst_41 = arith.constant dense<0.000000e+00> : vector<32x32xf32>
    %90 = tpu.matmul %9, %89, %cst_41 {dimension_numbers = #tpu.dot_dimension_numbers<[1], [0], [0], [1], [0, 0, 1, 1], [], []>} : vector<32x3xf32>, vector<3x32xf32>, vector<32x32xf32> -> vector<32x32xf32>
    %c0_42 = arith.constant 0 : index
    %c32 = arith.constant 32 : index
    %c0_43 = arith.constant 0 : index
    %91 = vector.load %arg8[%c0_42, %c32, %c0_43] : memref<2x128x32xf32, #tpu.memory_space<vmem>>, vector<1x32x32xf32>
    %92 = vector.shape_cast %91 : vector<1x32x32xf32> to vector<32x32xf32>
    %93 = vector.shape_cast %90 : vector<32x32xf32> to vector<1x32x32xf32>
    tpu.vector_store %arg8[%c0_42, %c32, %c0_43], %93 {strides = array<i32>} : memref<2x128x32xf32, #tpu.memory_space<vmem>>, vector<1x32x32xf32>,
    %94 = vector.extract_strided_slice %14 {offsets = [0, 2], sizes = [8, 1], strides = [1, 1]} : vector<8x8xf32> to vector<8x1xf32>
    %95 = vector.extract_strided_slice %14 {offsets = [0, 3], sizes = [8, 1], strides = [1, 1]} : vector<8x8xf32> to vector<8x1xf32>
    %96 = math.floor %94 : vector<8x1xf32>
    %97 = arith.subf %94, %96 : vector<8x1xf32>
    %cst_44 = arith.constant 0.000000e+00 : f32
    %98 = vector.broadcast %cst_44 : f32 to vector<8x1xf32>
    %99 = arith.cmpf oeq, %96, %98 : vector<8x1xf32>
    %cst_45 = arith.constant 1.000000e+00 : f32
    %100 = vector.broadcast %cst_45 : f32 to vector<8x1xf32>
    %101 = arith.subf %100, %97 : vector<8x1xf32>
    %cst_46 = arith.constant 0.000000e+00 : f32
    %102 = vector.broadcast %cst_46 : f32 to vector<8x1xf32>
    %103 = arith.select %99, %101, %102 : vector<8x1xi1>, vector<8x1xf32>
    %cst_47 = arith.constant -1.000000e+00 : f32
    %104 = vector.broadcast %cst_47 : f32 to vector<8x1xf32>
    %105 = arith.cmpf oeq, %96, %104 : vector<8x1xf32>
    %cst_48 = arith.constant 0.000000e+00 : f32
    %106 = vector.broadcast %cst_48 : f32 to vector<8x1xf32>
    %107 = arith.select %105, %97, %106 : vector<8x1xi1>, vector<8x1xf32>
    %108 = arith.addf %103, %107 : vector<8x1xf32>
    %cst_49 = arith.constant -1.000000e+00 : f32
    %109 = vector.broadcast %cst_49 : f32 to vector<8x1xf32>
    %110 = arith.cmpf ogt, %94, %109 : vector<8x1xf32>
    %cst_50 = arith.constant 1.000000e+00 : f32
    %111 = vector.broadcast %cst_50 : f32 to vector<8x1xf32>
    %112 = arith.cmpf olt, %94, %111 : vector<8x1xf32>
    %113 = arith.andi %110, %112 : vector<8x1xi1>
    %cst_51 = arith.constant 0.000000e+00 : f32
    %114 = vector.broadcast %cst_51 : f32 to vector<8x1xf32>
    %115 = arith.select %113, %108, %114 : vector<8x1xi1>, vector<8x1xf32>
    %cst_52 = arith.constant 1.000000e+00 : f32
    %116 = vector.broadcast %cst_52 : f32 to vector<8x1xf32>
    %117 = arith.addf %4, %116 : vector<8x1xf32>
    %118 = arith.addf %117, %95 : vector<8x1xf32>
    %cst_53 = arith.constant -1.000000e+00 : f32
    %119 = vector.broadcast %cst_53 : f32 to vector<8x1xf32>
    %120 = arith.cmpf ogt, %118, %119 : vector<8x1xf32>
    %cst_54 = arith.constant 3.200000e+01 : f32
    %121 = vector.broadcast %cst_54 : f32 to vector<8x1xf32>
    %122 = arith.cmpf olt, %118, %121 : vector<8x1xf32>
    %123 = arith.andi %120, %122 : vector<8x1xi1>
    %124 = math.floor %118 : vector<8x1xf32>
    %125 = arith.subf %118, %124 : vector<8x1xf32>
    %126 = arith.fptosi %124 : vector<8x1xf32> to vector<8x1xi32>
    %c0_i32_55 = arith.constant 0 : i32
    %127 = vector.broadcast %c0_i32_55 : i32 to vector<8x1xi32>
    %128 = arith.cmpi sge, %126, %127 : vector<8x1xi32>
    %129 = arith.andi %128, %123 : vector<8x1xi1>
    %cst_56 = arith.constant 1.000000e+00 : f32
    %130 = vector.broadcast %cst_56 : f32 to vector<8x1xf32>
    %131 = arith.subf %130, %125 : vector<8x1xf32>
    %cst_57 = arith.constant 0.000000e+00 : f32
    %132 = vector.broadcast %cst_57 : f32 to vector<8x1xf32>
    %133 = arith.select %129, %131, %132 : vector<8x1xi1>, vector<8x1xf32>
    %134 = arith.mulf %133, %115 : vector<8x1xf32>
    %c1_i32_58 = arith.constant 1 : i32
    %135 = vector.broadcast %c1_i32_58 : i32 to vector<8x1xi32>
    %136 = arith.addi %126, %135 : vector<8x1xi32>
    %c31_i32_59 = arith.constant 31 : i32
    %137 = vector.broadcast %c31_i32_59 : i32 to vector<8x1xi32>
    %138 = arith.cmpi sle, %136, %137 : vector<8x1xi32>
    %139 = arith.andi %138, %123 : vector<8x1xi1>
    %cst_60 = arith.constant 0.000000e+00 : f32
    %140 = vector.broadcast %cst_60 : f32 to vector<8x1xf32>
    %141 = arith.select %139, %125, %140 : vector<8x1xi1>, vector<8x1xf32>
    %142 = arith.mulf %141, %115 : vector<8x1xf32>
    %143 = vector.broadcast %126 : vector<8x1xi32> to vector<8x32xi32>
    %144 = arith.cmpi eq, %0, %143 : vector<8x32xi32>
    %cst_61 = arith.constant 0.000000e+00 : f32
    %145 = vector.shape_cast %134 : vector<8x1xf32> to vector<8x1xf32>
    %146 = vector.broadcast %145 : vector<8x1xf32> to vector<8x32xf32>
    %147 = vector.broadcast %cst_61 : f32 to vector<8x32xf32>
    %148 = arith.select %144, %146, %147 : vector<8x32xi1>, vector<8x32xf32>
    %c1_i32_62 = arith.constant 1 : i32
    %149 = vector.broadcast %c1_i32_62 : i32 to vector<8x1xi32>
    %150 = arith.addi %126, %149 : vector<8x1xi32>
    %151 = vector.broadcast %150 : vector<8x1xi32> to vector<8x32xi32>
    %152 = arith.cmpi eq, %0, %151 : vector<8x32xi32>
    %cst_63 = arith.constant 0.000000e+00 : f32
    %153 = vector.shape_cast %142 : vector<8x1xf32> to vector<8x1xf32>
    %154 = vector.broadcast %153 : vector<8x1xf32> to vector<8x32xf32>
    %155 = vector.broadcast %cst_63 : f32 to vector<8x32xf32>
    %156 = arith.select %152, %154, %155 : vector<8x32xi1>, vector<8x32xf32>
    %157 = arith.addf %148, %156 : vector<8x32xf32>
    %c0_64 = arith.constant 0 : index
    %c0_65 = arith.constant 0 : index
    %c32_66 = arith.constant 32 : index
    %158 = vector.load %arg7[%c0_64, %c0_65, %c32_66] : memref<2x8x128xf32, #tpu.memory_space<vmem>>, vector<1x8x32xf32>
    %159 = vector.shape_cast %158 : vector<1x8x32xf32> to vector<8x32xf32>
    %160 = vector.shape_cast %157 : vector<8x32xf32> to vector<1x8x32xf32>
    tpu.vector_store %arg7[%c0_64, %c0_65, %c32_66], %160 {strides = array<i32>} : memref<2x8x128xf32, #tpu.memory_space<vmem>>, vector<1x8x32xf32>,
    %c2 = arith.constant 2 : index
    %c0_67 = arith.constant 0 : index
    %c0_68 = arith.constant 0 : index
    %161 = vector.load %arg4[%c2, %c0_67, %c0_68] : memref<4x3x32xf32, #tpu.memory_space<vmem>>, vector<1x3x32xf32>
    %162 = vector.shape_cast %161 : vector<1x3x32xf32> to vector<3x32xf32>
    %cst_69 = arith.constant dense<0.000000e+00> : vector<32x32xf32>
    %163 = tpu.matmul %9, %162, %cst_69 {dimension_numbers = #tpu.dot_dimension_numbers<[1], [0], [0], [1], [0, 0, 1, 1], [], []>} : vector<32x3xf32>, vector<3x32xf32>, vector<32x32xf32> -> vector<32x32xf32>
    %c0_70 = arith.constant 0 : index
    %c64 = arith.constant 64 : index
    %c0_71 = arith.constant 0 : index
    %164 = vector.load %arg8[%c0_70, %c64, %c0_71] : memref<2x128x32xf32, #tpu.memory_space<vmem>>, vector<1x32x32xf32>
    %165 = vector.shape_cast %164 : vector<1x32x32xf32> to vector<32x32xf32>
    %166 = vector.shape_cast %163 : vector<32x32xf32> to vector<1x32x32xf32>
    tpu.vector_store %arg8[%c0_70, %c64, %c0_71], %166 {strides = array<i32>} : memref<2x128x32xf32, #tpu.memory_space<vmem>>, vector<1x32x32xf32>,
    %167 = vector.extract_strided_slice %14 {offsets = [0, 4], sizes = [8, 1], strides = [1, 1]} : vector<8x8xf32> to vector<8x1xf32>
    %168 = vector.extract_strided_slice %14 {offsets = [0, 5], sizes = [8, 1], strides = [1, 1]} : vector<8x8xf32> to vector<8x1xf32>
    %169 = math.floor %167 : vector<8x1xf32>
    %170 = arith.subf %167, %169 : vector<8x1xf32>
    %cst_72 = arith.constant 0.000000e+00 : f32
    %171 = vector.broadcast %cst_72 : f32 to vector<8x1xf32>
    %172 = arith.cmpf oeq, %169, %171 : vector<8x1xf32>
    %cst_73 = arith.constant 1.000000e+00 : f32
    %173 = vector.broadcast %cst_73 : f32 to vector<8x1xf32>
    %174 = arith.subf %173, %170 : vector<8x1xf32>
    %cst_74 = arith.constant 0.000000e+00 : f32
    %175 = vector.broadcast %cst_74 : f32 to vector<8x1xf32>
    %176 = arith.select %172, %174, %175 : vector<8x1xi1>, vector<8x1xf32>
    %cst_75 = arith.constant -1.000000e+00 : f32
    %177 = vector.broadcast %cst_75 : f32 to vector<8x1xf32>
    %178 = arith.cmpf oeq, %169, %177 : vector<8x1xf32>
    %cst_76 = arith.constant 0.000000e+00 : f32
    %179 = vector.broadcast %cst_76 : f32 to vector<8x1xf32>
    %180 = arith.select %178, %170, %179 : vector<8x1xi1>, vector<8x1xf32>
    %181 = arith.addf %176, %180 : vector<8x1xf32>
    %cst_77 = arith.constant -1.000000e+00 : f32
    %182 = vector.broadcast %cst_77 : f32 to vector<8x1xf32>
    %183 = arith.cmpf ogt, %167, %182 : vector<8x1xf32>
    %cst_78 = arith.constant 1.000000e+00 : f32
    %184 = vector.broadcast %cst_78 : f32 to vector<8x1xf32>
    %185 = arith.cmpf olt, %167, %184 : vector<8x1xf32>
    %186 = arith.andi %183, %185 : vector<8x1xi1>
    %cst_79 = arith.constant 0.000000e+00 : f32
    %187 = vector.broadcast %cst_79 : f32 to vector<8x1xf32>
    %188 = arith.select %186, %181, %187 : vector<8x1xi1>, vector<8x1xf32>
    %cst_80 = arith.constant 2.000000e+00 : f32
    %189 = vector.broadcast %cst_80 : f32 to vector<8x1xf32>
    %190 = arith.addf %4, %189 : vector<8x1xf32>
    %191 = arith.addf %190, %168 : vector<8x1xf32>
    %cst_81 = arith.constant -1.000000e+00 : f32
    %192 = vector.broadcast %cst_81 : f32 to vector<8x1xf32>
    %193 = arith.cmpf ogt, %191, %192 : vector<8x1xf32>
    %cst_82 = arith.constant 3.200000e+01 : f32
    %194 = vector.broadcast %cst_82 : f32 to vector<8x1xf32>
    %195 = arith.cmpf olt, %191, %194 : vector<8x1xf32>
    %196 = arith.andi %193, %195 : vector<8x1xi1>
    %197 = math.floor %191 : vector<8x1xf32>
    %198 = arith.subf %191, %197 : vector<8x1xf32>
    %199 = arith.fptosi %197 : vector<8x1xf32> to vector<8x1xi32>
    %c0_i32_83 = arith.constant 0 : i32
    %200 = vector.broadcast %c0_i32_83 : i32 to vector<8x1xi32>
    %201 = arith.cmpi sge, %199, %200 : vector<8x1xi32>
    %202 = arith.andi %201, %196 : vector<8x1xi1>
    %cst_84 = arith.constant 1.000000e+00 : f32
    %203 = vector.broadcast %cst_84 : f32 to vector<8x1xf32>
    %204 = arith.subf %203, %198 : vector<8x1xf32>
    %cst_85 = arith.constant 0.000000e+00 : f32
    %205 = vector.broadcast %cst_85 : f32 to vector<8x1xf32>
    %206 = arith.select %202, %204, %205 : vector<8x1xi1>, vector<8x1xf32>
    %207 = arith.mulf %206, %188 : vector<8x1xf32>
    %c1_i32_86 = arith.constant 1 : i32
    %208 = vector.broadcast %c1_i32_86 : i32 to vector<8x1xi32>
    %209 = arith.addi %199, %208 : vector<8x1xi32>
    %c31_i32_87 = arith.constant 31 : i32
    %210 = vector.broadcast %c31_i32_87 : i32 to vector<8x1xi32>
    %211 = arith.cmpi sle, %209, %210 : vector<8x1xi32>
    %212 = arith.andi %211, %196 : vector<8x1xi1>
    %cst_88 = arith.constant 0.000000e+00 : f32
    %213 = vector.broadcast %cst_88 : f32 to vector<8x1xf32>
    %214 = arith.select %212, %198, %213 : vector<8x1xi1>, vector<8x1xf32>
    %215 = arith.mulf %214, %188 : vector<8x1xf32>
    %216 = vector.broadcast %199 : vector<8x1xi32> to vector<8x32xi32>
    %217 = arith.cmpi eq, %0, %216 : vector<8x32xi32>
    %cst_89 = arith.constant 0.000000e+00 : f32
    %218 = vector.shape_cast %207 : vector<8x1xf32> to vector<8x1xf32>
    %219 = vector.broadcast %218 : vector<8x1xf32> to vector<8x32xf32>
    %220 = vector.broadcast %cst_89 : f32 to vector<8x32xf32>
    %221 = arith.select %217, %219, %220 : vector<8x32xi1>, vector<8x32xf32>
    %c1_i32_90 = arith.constant 1 : i32
    %222 = vector.broadcast %c1_i32_90 : i32 to vector<8x1xi32>
    %223 = arith.addi %199, %222 : vector<8x1xi32>
    %224 = vector.broadcast %223 : vector<8x1xi32> to vector<8x32xi32>
    %225 = arith.cmpi eq, %0, %224 : vector<8x32xi32>
    %cst_91 = arith.constant 0.000000e+00 : f32
    %226 = vector.shape_cast %215 : vector<8x1xf32> to vector<8x1xf32>
    %227 = vector.broadcast %226 : vector<8x1xf32> to vector<8x32xf32>
    %228 = vector.broadcast %cst_91 : f32 to vector<8x32xf32>
    %229 = arith.select %225, %227, %228 : vector<8x32xi1>, vector<8x32xf32>
    %230 = arith.addf %221, %229 : vector<8x32xf32>
    %c0_92 = arith.constant 0 : index
    %c0_93 = arith.constant 0 : index
    %c64_94 = arith.constant 64 : index
    %231 = vector.load %arg7[%c0_92, %c0_93, %c64_94] : memref<2x8x128xf32, #tpu.memory_space<vmem>>, vector<1x8x32xf32>
    %232 = vector.shape_cast %231 : vector<1x8x32xf32> to vector<8x32xf32>
    %233 = vector.shape_cast %230 : vector<8x32xf32> to vector<1x8x32xf32>
    tpu.vector_store %arg7[%c0_92, %c0_93, %c64_94], %233 {strides = array<i32>} : memref<2x8x128xf32, #tpu.memory_space<vmem>>, vector<1x8x32xf32>,
    %c3 = arith.constant 3 : index
    %c0_95 = arith.constant 0 : index
    %c0_96 = arith.constant 0 : index
    %234 = vector.load %arg4[%c3, %c0_95, %c0_96] : memref<4x3x32xf32, #tpu.memory_space<vmem>>, vector<1x3x32xf32>
    %235 = vector.shape_cast %234 : vector<1x3x32xf32> to vector<3x32xf32>
    %cst_97 = arith.constant dense<0.000000e+00> : vector<32x32xf32>
    %236 = tpu.matmul %9, %235, %cst_97 {dimension_numbers = #tpu.dot_dimension_numbers<[1], [0], [0], [1], [0, 0, 1, 1], [], []>} : vector<32x3xf32>, vector<3x32xf32>, vector<32x32xf32> -> vector<32x32xf32>
    %c0_98 = arith.constant 0 : index
    %c96 = arith.constant 96 : index
    %c0_99 = arith.constant 0 : index
    %237 = vector.load %arg8[%c0_98, %c96, %c0_99] : memref<2x128x32xf32, #tpu.memory_space<vmem>>, vector<1x32x32xf32>
    %238 = vector.shape_cast %237 : vector<1x32x32xf32> to vector<32x32xf32>
    %239 = vector.shape_cast %236 : vector<32x32xf32> to vector<1x32x32xf32>
    tpu.vector_store %arg8[%c0_98, %c96, %c0_99], %239 {strides = array<i32>} : memref<2x128x32xf32, #tpu.memory_space<vmem>>, vector<1x32x32xf32>,
    %240 = vector.extract_strided_slice %14 {offsets = [0, 6], sizes = [8, 1], strides = [1, 1]} : vector<8x8xf32> to vector<8x1xf32>
    %241 = vector.extract_strided_slice %14 {offsets = [0, 7], sizes = [8, 1], strides = [1, 1]} : vector<8x8xf32> to vector<8x1xf32>
    %242 = math.floor %240 : vector<8x1xf32>
    %243 = arith.subf %240, %242 : vector<8x1xf32>
    %cst_100 = arith.constant 0.000000e+00 : f32
    %244 = vector.broadcast %cst_100 : f32 to vector<8x1xf32>
    %245 = arith.cmpf oeq, %242, %244 : vector<8x1xf32>
    %cst_101 = arith.constant 1.000000e+00 : f32
    %246 = vector.broadcast %cst_101 : f32 to vector<8x1xf32>
    %247 = arith.subf %246, %243 : vector<8x1xf32>
    %cst_102 = arith.constant 0.000000e+00 : f32
    %248 = vector.broadcast %cst_102 : f32 to vector<8x1xf32>
    %249 = arith.select %245, %247, %248 : vector<8x1xi1>, vector<8x1xf32>
    %cst_103 = arith.constant -1.000000e+00 : f32
    %250 = vector.broadcast %cst_103 : f32 to vector<8x1xf32>
    %251 = arith.cmpf oeq, %242, %250 : vector<8x1xf32>
    %cst_104 = arith.constant 0.000000e+00 : f32
    %252 = vector.broadcast %cst_104 : f32 to vector<8x1xf32>
    %253 = arith.select %251, %243, %252 : vector<8x1xi1>, vector<8x1xf32>
    %254 = arith.addf %249, %253 : vector<8x1xf32>
    %cst_105 = arith.constant -1.000000e+00 : f32
    %255 = vector.broadcast %cst_105 : f32 to vector<8x1xf32>
    %256 = arith.cmpf ogt, %240, %255 : vector<8x1xf32>
    %cst_106 = arith.constant 1.000000e+00 : f32
    %257 = vector.broadcast %cst_106 : f32 to vector<8x1xf32>
    %258 = arith.cmpf olt, %240, %257 : vector<8x1xf32>
    %259 = arith.andi %256, %258 : vector<8x1xi1>
    %cst_107 = arith.constant 0.000000e+00 : f32
    %260 = vector.broadcast %cst_107 : f32 to vector<8x1xf32>
    %261 = arith.select %259, %254, %260 : vector<8x1xi1>, vector<8x1xf32>
    %cst_108 = arith.constant 3.000000e+00 : f32
    %262 = vector.broadcast %cst_108 : f32 to vector<8x1xf32>
    %263 = arith.addf %4, %262 : vector<8x1xf32>
    %264 = arith.addf %263, %241 : vector<8x1xf32>
    %cst_109 = arith.constant -1.000000e+00 : f32
    %265 = vector.broadcast %cst_109 : f32 to vector<8x1xf32>
    %266 = arith.cmpf ogt, %264, %265 : vector<8x1xf32>
    %cst_110 = arith.constant 3.200000e+01 : f32
    %267 = vector.broadcast %cst_110 : f32 to vector<8x1xf32>
    %268 = arith.cmpf olt, %264, %267 : vector<8x1xf32>
    %269 = arith.andi %266, %268 : vector<8x1xi1>
    %270 = math.floor %264 : vector<8x1xf32>
    %271 = arith.subf %264, %270 : vector<8x1xf32>
    %272 = arith.fptosi %270 : vector<8x1xf32> to vector<8x1xi32>
    %c0_i32_111 = arith.constant 0 : i32
    %273 = vector.broadcast %c0_i32_111 : i32 to vector<8x1xi32>
    %274 = arith.cmpi sge, %272, %273 : vector<8x1xi32>
    %275 = arith.andi %274, %269 : vector<8x1xi1>
    %cst_112 = arith.constant 1.000000e+00 : f32
    %276 = vector.broadcast %cst_112 : f32 to vector<8x1xf32>
    %277 = arith.subf %276, %271 : vector<8x1xf32>
    %cst_113 = arith.constant 0.000000e+00 : f32
    %278 = vector.broadcast %cst_113 : f32 to vector<8x1xf32>
    %279 = arith.select %275, %277, %278 : vector<8x1xi1>, vector<8x1xf32>
    %280 = arith.mulf %279, %261 : vector<8x1xf32>
    %c1_i32_114 = arith.constant 1 : i32
    %281 = vector.broadcast %c1_i32_114 : i32 to vector<8x1xi32>
    %282 = arith.addi %272, %281 : vector<8x1xi32>
    %c31_i32_115 = arith.constant 31 : i32
    %283 = vector.broadcast %c31_i32_115 : i32 to vector<8x1xi32>
    %284 = arith.cmpi sle, %282, %283 : vector<8x1xi32>
    %285 = arith.andi %284, %269 : vector<8x1xi1>
    %cst_116 = arith.constant 0.000000e+00 : f32
    %286 = vector.broadcast %cst_116 : f32 to vector<8x1xf32>
    %287 = arith.select %285, %271, %286 : vector<8x1xi1>, vector<8x1xf32>
    %288 = arith.mulf %287, %261 : vector<8x1xf32>
    %289 = vector.broadcast %272 : vector<8x1xi32> to vector<8x32xi32>
    %290 = arith.cmpi eq, %0, %289 : vector<8x32xi32>
    %cst_117 = arith.constant 0.000000e+00 : f32
    %291 = vector.shape_cast %280 : vector<8x1xf32> to vector<8x1xf32>
    %292 = vector.broadcast %291 : vector<8x1xf32> to vector<8x32xf32>
    %293 = vector.broadcast %cst_117 : f32 to vector<8x32xf32>
    %294 = arith.select %290, %292, %293 : vector<8x32xi1>, vector<8x32xf32>
    %c1_i32_118 = arith.constant 1 : i32
    %295 = vector.broadcast %c1_i32_118 : i32 to vector<8x1xi32>
    %296 = arith.addi %272, %295 : vector<8x1xi32>
    %297 = vector.broadcast %296 : vector<8x1xi32> to vector<8x32xi32>
    %298 = arith.cmpi eq, %0, %297 : vector<8x32xi32>
    %cst_119 = arith.constant 0.000000e+00 : f32
    %299 = vector.shape_cast %288 : vector<8x1xf32> to vector<8x1xf32>
    %300 = vector.broadcast %299 : vector<8x1xf32> to vector<8x32xf32>
    %301 = vector.broadcast %cst_119 : f32 to vector<8x32xf32>
    %302 = arith.select %298, %300, %301 : vector<8x32xi1>, vector<8x32xf32>
    %303 = arith.addf %294, %302 : vector<8x32xf32>
    %c0_120 = arith.constant 0 : index
    %c0_121 = arith.constant 0 : index
    %c96_122 = arith.constant 96 : index
    %304 = vector.load %arg7[%c0_120, %c0_121, %c96_122] : memref<2x8x128xf32, #tpu.memory_space<vmem>>, vector<1x8x32xf32>
    %305 = vector.shape_cast %304 : vector<1x8x32xf32> to vector<8x32xf32>
    %306 = vector.shape_cast %303 : vector<8x32xf32> to vector<1x8x32xf32>
    tpu.vector_store %arg7[%c0_120, %c0_121, %c96_122], %306 {strides = array<i32>} : memref<2x8x128xf32, #tpu.memory_space<vmem>>, vector<1x8x32xf32>,
    %c0_123 = arith.constant 0 : index
    %c0_124 = arith.constant 0 : index
    %c0_125 = arith.constant 0 : index
    %307 = vector.load %arg7[%c0_123, %c0_124, %c0_125] : memref<2x8x128xf32, #tpu.memory_space<vmem>>, vector<1x8x128xf32>
    %308 = vector.shape_cast %307 : vector<1x8x128xf32> to vector<8x128xf32>
    %c0_126 = arith.constant 0 : index
    %c0_127 = arith.constant 0 : index
    %c0_128 = arith.constant 0 : index
    %309 = vector.load %arg8[%c0_126, %c0_127, %c0_128] : memref<2x128x32xf32, #tpu.memory_space<vmem>>, vector<1x128x32xf32>
    %310 = vector.shape_cast %309 : vector<1x128x32xf32> to vector<128x32xf32>
    %cst_129 = arith.constant dense<0.000000e+00> : vector<8x32xf32>
    %311 = tpu.matmul %308, %310, %cst_129 {dimension_numbers = #tpu.dot_dimension_numbers<[1], [0], [0], [1], [0, 0, 1, 1], [], []>} : vector<8x128xf32>, vector<128x32xf32>, vector<8x32xf32> -> vector<8x32xf32>
    %312 = vector.broadcast %7 : vector<1x32xf32> to vector<8x32xf32>
    %313 = arith.addf %311, %312 : vector<8x32xf32>
    %c0_130 = arith.constant 0 : index
    %c0_131 = arith.constant 0 : index
    %c0_132 = arith.constant 0 : index
    %314 = vector.load %arg6[%c0_130, %c0_131, %c0_132] : memref<2x8x32xf32, #tpu.memory_space<vmem>>, vector<1x8x32xf32>
    %315 = vector.shape_cast %314 : vector<1x8x32xf32> to vector<8x32xf32>
    %316 = vector.shape_cast %313 : vector<8x32xf32> to vector<1x8x32xf32>
    tpu.vector_store %arg6[%c0_130, %c0_131, %c0_132], %316 {strides = array<i32>} : memref<2x8x32xf32, #tpu.memory_space<vmem>>, vector<1x8x32xf32>,
    %c1_133 = arith.constant 1 : index
    %c0_134 = arith.constant 0 : index
    %c0_135 = arith.constant 0 : index
    %317 = vector.load %arg0[%c1_133, %c0_134, %c0_135] : memref<2x32x3xf32, #tpu.memory_space<vmem>>, vector<1x32x3xf32>
    %318 = vector.shape_cast %317 : vector<1x32x3xf32> to vector<32x3xf32>
    %c1_136 = arith.constant 1 : index
    %c0_137 = arith.constant 0 : index
    %c0_138 = arith.constant 0 : index
    %319 = vector.load %arg1[%c1_136, %c0_137, %c0_138] : memref<2x8x12xf32, #tpu.memory_space<vmem>>, vector<1x8x12xf32>
    %320 = vector.shape_cast %319 : vector<1x8x12xf32> to vector<8x12xf32>
    %cst_139 = arith.constant dense<0.000000e+00> : vector<8x8xf32>
    %321 = tpu.matmul %320, %5, %cst_139 {dimension_numbers = #tpu.dot_dimension_numbers<[1], [0], [0], [1], [0, 0, 1, 1], [], []>} : vector<8x12xf32>, vector<12x8xf32>, vector<8x8xf32> -> vector<8x8xf32>
    %322 = vector.broadcast %6 : vector<1x8xf32> to vector<8x8xf32>
    %323 = arith.addf %321, %322 : vector<8x8xf32>
    %c0_140 = arith.constant 0 : index
    %c0_141 = arith.constant 0 : index
    %c0_142 = arith.constant 0 : index
    %324 = vector.load %arg4[%c0_140, %c0_141, %c0_142] : memref<4x3x32xf32, #tpu.memory_space<vmem>>, vector<1x3x32xf32>
    %325 = vector.shape_cast %324 : vector<1x3x32xf32> to vector<3x32xf32>
    %cst_143 = arith.constant dense<0.000000e+00> : vector<32x32xf32>
    %326 = tpu.matmul %318, %325, %cst_143 {dimension_numbers = #tpu.dot_dimension_numbers<[1], [0], [0], [1], [0, 0, 1, 1], [], []>} : vector<32x3xf32>, vector<3x32xf32>, vector<32x32xf32> -> vector<32x32xf32>
    %c1_144 = arith.constant 1 : index
    %c0_145 = arith.constant 0 : index
    %c0_146 = arith.constant 0 : index
    %327 = vector.load %arg8[%c1_144, %c0_145, %c0_146] : memref<2x128x32xf32, #tpu.memory_space<vmem>>, vector<1x32x32xf32>
    %328 = vector.shape_cast %327 : vector<1x32x32xf32> to vector<32x32xf32>
    %329 = vector.shape_cast %326 : vector<32x32xf32> to vector<1x32x32xf32>
    tpu.vector_store %arg8[%c1_144, %c0_145, %c0_146], %329 {strides = array<i32>} : memref<2x128x32xf32, #tpu.memory_space<vmem>>, vector<1x32x32xf32>,
    %330 = vector.extract_strided_slice %323 {offsets = [0, 0], sizes = [8, 1], strides = [1, 1]} : vector<8x8xf32> to vector<8x1xf32>
    %331 = vector.extract_strided_slice %323 {offsets = [0, 1], sizes = [8, 1], strides = [1, 1]} : vector<8x8xf32> to vector<8x1xf32>
    %332 = math.floor %330 : vector<8x1xf32>
    %333 = arith.subf %330, %332 : vector<8x1xf32>
    %cst_147 = arith.constant 0.000000e+00 : f32
    %334 = vector.broadcast %cst_147 : f32 to vector<8x1xf32>
    %335 = arith.cmpf oeq, %332, %334 : vector<8x1xf32>
    %cst_148 = arith.constant 1.000000e+00 : f32
    %336 = vector.broadcast %cst_148 : f32 to vector<8x1xf32>
    %337 = arith.subf %336, %333 : vector<8x1xf32>
    %cst_149 = arith.constant 0.000000e+00 : f32
    %338 = vector.broadcast %cst_149 : f32 to vector<8x1xf32>
    %339 = arith.select %335, %337, %338 : vector<8x1xi1>, vector<8x1xf32>
    %cst_150 = arith.constant -1.000000e+00 : f32
    %340 = vector.broadcast %cst_150 : f32 to vector<8x1xf32>
    %341 = arith.cmpf oeq, %332, %340 : vector<8x1xf32>
    %cst_151 = arith.constant 0.000000e+00 : f32
    %342 = vector.broadcast %cst_151 : f32 to vector<8x1xf32>
    %343 = arith.select %341, %333, %342 : vector<8x1xi1>, vector<8x1xf32>
    %344 = arith.addf %339, %343 : vector<8x1xf32>
    %cst_152 = arith.constant -1.000000e+00 : f32
    %345 = vector.broadcast %cst_152 : f32 to vector<8x1xf32>
    %346 = arith.cmpf ogt, %330, %345 : vector<8x1xf32>
    %cst_153 = arith.constant 1.000000e+00 : f32
    %347 = vector.broadcast %cst_153 : f32 to vector<8x1xf32>
    %348 = arith.cmpf olt, %330, %347 : vector<8x1xf32>
    %349 = arith.andi %346, %348 : vector<8x1xi1>
    %cst_154 = arith.constant 0.000000e+00 : f32
    %350 = vector.broadcast %cst_154 : f32 to vector<8x1xf32>
    %351 = arith.select %349, %344, %350 : vector<8x1xi1>, vector<8x1xf32>
    %cst_155 = arith.constant 0.000000e+00 : f32
    %352 = vector.broadcast %cst_155 : f32 to vector<8x1xf32>
    %353 = arith.addf %4, %352 : vector<8x1xf32>
    %354 = arith.addf %353, %331 : vector<8x1xf32>
    %cst_156 = arith.constant -1.000000e+00 : f32
    %355 = vector.broadcast %cst_156 : f32 to vector<8x1xf32>
    %356 = arith.cmpf ogt, %354, %355 : vector<8x1xf32>
    %cst_157 = arith.constant 3.200000e+01 : f32
    %357 = vector.broadcast %cst_157 : f32 to vector<8x1xf32>
    %358 = arith.cmpf olt, %354, %357 : vector<8x1xf32>
    %359 = arith.andi %356, %358 : vector<8x1xi1>
    %360 = math.floor %354 : vector<8x1xf32>
    %361 = arith.subf %354, %360 : vector<8x1xf32>
    %362 = arith.fptosi %360 : vector<8x1xf32> to vector<8x1xi32>
    %c0_i32_158 = arith.constant 0 : i32
    %363 = vector.broadcast %c0_i32_158 : i32 to vector<8x1xi32>
    %364 = arith.cmpi sge, %362, %363 : vector<8x1xi32>
    %365 = arith.andi %364, %359 : vector<8x1xi1>
    %cst_159 = arith.constant 1.000000e+00 : f32
    %366 = vector.broadcast %cst_159 : f32 to vector<8x1xf32>
    %367 = arith.subf %366, %361 : vector<8x1xf32>
    %cst_160 = arith.constant 0.000000e+00 : f32
    %368 = vector.broadcast %cst_160 : f32 to vector<8x1xf32>
    %369 = arith.select %365, %367, %368 : vector<8x1xi1>, vector<8x1xf32>
    %370 = arith.mulf %369, %351 : vector<8x1xf32>
    %c1_i32_161 = arith.constant 1 : i32
    %371 = vector.broadcast %c1_i32_161 : i32 to vector<8x1xi32>
    %372 = arith.addi %362, %371 : vector<8x1xi32>
    %c31_i32_162 = arith.constant 31 : i32
    %373 = vector.broadcast %c31_i32_162 : i32 to vector<8x1xi32>
    %374 = arith.cmpi sle, %372, %373 : vector<8x1xi32>
    %375 = arith.andi %374, %359 : vector<8x1xi1>
    %cst_163 = arith.constant 0.000000e+00 : f32
    %376 = vector.broadcast %cst_163 : f32 to vector<8x1xf32>
    %377 = arith.select %375, %361, %376 : vector<8x1xi1>, vector<8x1xf32>
    %378 = arith.mulf %377, %351 : vector<8x1xf32>
    %379 = vector.broadcast %362 : vector<8x1xi32> to vector<8x32xi32>
    %380 = arith.cmpi eq, %0, %379 : vector<8x32xi32>
    %cst_164 = arith.constant 0.000000e+00 : f32
    %381 = vector.shape_cast %370 : vector<8x1xf32> to vector<8x1xf32>
    %382 = vector.broadcast %381 : vector<8x1xf32> to vector<8x32xf32>
    %383 = vector.broadcast %cst_164 : f32 to vector<8x32xf32>
    %384 = arith.select %380, %382, %383 : vector<8x32xi1>, vector<8x32xf32>
    %c1_i32_165 = arith.constant 1 : i32
    %385 = vector.broadcast %c1_i32_165 : i32 to vector<8x1xi32>
    %386 = arith.addi %362, %385 : vector<8x1xi32>
    %387 = vector.broadcast %386 : vector<8x1xi32> to vector<8x32xi32>
    %388 = arith.cmpi eq, %0, %387 : vector<8x32xi32>
    %cst_166 = arith.constant 0.000000e+00 : f32
    %389 = vector.shape_cast %378 : vector<8x1xf32> to vector<8x1xf32>
    %390 = vector.broadcast %389 : vector<8x1xf32> to vector<8x32xf32>
    %391 = vector.broadcast %cst_166 : f32 to vector<8x32xf32>
    %392 = arith.select %388, %390, %391 : vector<8x32xi1>, vector<8x32xf32>
    %393 = arith.addf %384, %392 : vector<8x32xf32>
    %c1_167 = arith.constant 1 : index
    %c0_168 = arith.constant 0 : index
    %c0_169 = arith.constant 0 : index
    %394 = vector.load %arg7[%c1_167, %c0_168, %c0_169] : memref<2x8x128xf32, #tpu.memory_space<vmem>>, vector<1x8x32xf32>
    %395 = vector.shape_cast %394 : vector<1x8x32xf32> to vector<8x32xf32>
    %396 = vector.shape_cast %393 : vector<8x32xf32> to vector<1x8x32xf32>
    tpu.vector_store %arg7[%c1_167, %c0_168, %c0_169], %396 {strides = array<i32>} : memref<2x8x128xf32, #tpu.memory_space<vmem>>, vector<1x8x32xf32>,
    %c1_170 = arith.constant 1 : index
    %c0_171 = arith.constant 0 : index
    %c0_172 = arith.constant 0 : index
    %397 = vector.load %arg4[%c1_170, %c0_171, %c0_172] : memref<4x3x32xf32, #tpu.memory_space<vmem>>, vector<1x3x32xf32>
    %398 = vector.shape_cast %397 : vector<1x3x32xf32> to vector<3x32xf32>
    %cst_173 = arith.constant dense<0.000000e+00> : vector<32x32xf32>
    %399 = tpu.matmul %318, %398, %cst_173 {dimension_numbers = #tpu.dot_dimension_numbers<[1], [0], [0], [1], [0, 0, 1, 1], [], []>} : vector<32x3xf32>, vector<3x32xf32>, vector<32x32xf32> -> vector<32x32xf32>
    %c1_174 = arith.constant 1 : index
    %c32_175 = arith.constant 32 : index
    %c0_176 = arith.constant 0 : index
    %400 = vector.load %arg8[%c1_174, %c32_175, %c0_176] : memref<2x128x32xf32, #tpu.memory_space<vmem>>, vector<1x32x32xf32>
    %401 = vector.shape_cast %400 : vector<1x32x32xf32> to vector<32x32xf32>
    %402 = vector.shape_cast %399 : vector<32x32xf32> to vector<1x32x32xf32>
    tpu.vector_store %arg8[%c1_174, %c32_175, %c0_176], %402 {strides = array<i32>} : memref<2x128x32xf32, #tpu.memory_space<vmem>>, vector<1x32x32xf32>,
    %403 = vector.extract_strided_slice %323 {offsets = [0, 2], sizes = [8, 1], strides = [1, 1]} : vector<8x8xf32> to vector<8x1xf32>
    %404 = vector.extract_strided_slice %323 {offsets = [0, 3], sizes = [8, 1], strides = [1, 1]} : vector<8x8xf32> to vector<8x1xf32>
    %405 = math.floor %403 : vector<8x1xf32>
    %406 = arith.subf %403, %405 : vector<8x1xf32>
    %cst_177 = arith.constant 0.000000e+00 : f32
    %407 = vector.broadcast %cst_177 : f32 to vector<8x1xf32>
    %408 = arith.cmpf oeq, %405, %407 : vector<8x1xf32>
    %cst_178 = arith.constant 1.000000e+00 : f32
    %409 = vector.broadcast %cst_178 : f32 to vector<8x1xf32>
    %410 = arith.subf %409, %406 : vector<8x1xf32>
    %cst_179 = arith.constant 0.000000e+00 : f32
    %411 = vector.broadcast %cst_179 : f32 to vector<8x1xf32>
    %412 = arith.select %408, %410, %411 : vector<8x1xi1>, vector<8x1xf32>
    %cst_180 = arith.constant -1.000000e+00 : f32
    %413 = vector.broadcast %cst_180 : f32 to vector<8x1xf32>
    %414 = arith.cmpf oeq, %405, %413 : vector<8x1xf32>
    %cst_181 = arith.constant 0.000000e+00 : f32
    %415 = vector.broadcast %cst_181 : f32 to vector<8x1xf32>
    %416 = arith.select %414, %406, %415 : vector<8x1xi1>, vector<8x1xf32>
    %417 = arith.addf %412, %416 : vector<8x1xf32>
    %cst_182 = arith.constant -1.000000e+00 : f32
    %418 = vector.broadcast %cst_182 : f32 to vector<8x1xf32>
    %419 = arith.cmpf ogt, %403, %418 : vector<8x1xf32>
    %cst_183 = arith.constant 1.000000e+00 : f32
    %420 = vector.broadcast %cst_183 : f32 to vector<8x1xf32>
    %421 = arith.cmpf olt, %403, %420 : vector<8x1xf32>
    %422 = arith.andi %419, %421 : vector<8x1xi1>
    %cst_184 = arith.constant 0.000000e+00 : f32
    %423 = vector.broadcast %cst_184 : f32 to vector<8x1xf32>
    %424 = arith.select %422, %417, %423 : vector<8x1xi1>, vector<8x1xf32>
    %cst_185 = arith.constant 1.000000e+00 : f32
    %425 = vector.broadcast %cst_185 : f32 to vector<8x1xf32>
    %426 = arith.addf %4, %425 : vector<8x1xf32>
    %427 = arith.addf %426, %404 : vector<8x1xf32>
    %cst_186 = arith.constant -1.000000e+00 : f32
    %428 = vector.broadcast %cst_186 : f32 to vector<8x1xf32>
    %429 = arith.cmpf ogt, %427, %428 : vector<8x1xf32>
    %cst_187 = arith.constant 3.200000e+01 : f32
    %430 = vector.broadcast %cst_187 : f32 to vector<8x1xf32>
    %431 = arith.cmpf olt, %427, %430 : vector<8x1xf32>
    %432 = arith.andi %429, %431 : vector<8x1xi1>
    %433 = math.floor %427 : vector<8x1xf32>
    %434 = arith.subf %427, %433 : vector<8x1xf32>
    %435 = arith.fptosi %433 : vector<8x1xf32> to vector<8x1xi32>
    %c0_i32_188 = arith.constant 0 : i32
    %436 = vector.broadcast %c0_i32_188 : i32 to vector<8x1xi32>
    %437 = arith.cmpi sge, %435, %436 : vector<8x1xi32>
    %438 = arith.andi %437, %432 : vector<8x1xi1>
    %cst_189 = arith.constant 1.000000e+00 : f32
    %439 = vector.broadcast %cst_189 : f32 to vector<8x1xf32>
    %440 = arith.subf %439, %434 : vector<8x1xf32>
    %cst_190 = arith.constant 0.000000e+00 : f32
    %441 = vector.broadcast %cst_190 : f32 to vector<8x1xf32>
    %442 = arith.select %438, %440, %441 : vector<8x1xi1>, vector<8x1xf32>
    %443 = arith.mulf %442, %424 : vector<8x1xf32>
    %c1_i32_191 = arith.constant 1 : i32
    %444 = vector.broadcast %c1_i32_191 : i32 to vector<8x1xi32>
    %445 = arith.addi %435, %444 : vector<8x1xi32>
    %c31_i32_192 = arith.constant 31 : i32
    %446 = vector.broadcast %c31_i32_192 : i32 to vector<8x1xi32>
    %447 = arith.cmpi sle, %445, %446 : vector<8x1xi32>
    %448 = arith.andi %447, %432 : vector<8x1xi1>
    %cst_193 = arith.constant 0.000000e+00 : f32
    %449 = vector.broadcast %cst_193 : f32 to vector<8x1xf32>
    %450 = arith.select %448, %434, %449 : vector<8x1xi1>, vector<8x1xf32>
    %451 = arith.mulf %450, %424 : vector<8x1xf32>
    %452 = vector.broadcast %435 : vector<8x1xi32> to vector<8x32xi32>
    %453 = arith.cmpi eq, %0, %452 : vector<8x32xi32>
    %cst_194 = arith.constant 0.000000e+00 : f32
    %454 = vector.shape_cast %443 : vector<8x1xf32> to vector<8x1xf32>
    %455 = vector.broadcast %454 : vector<8x1xf32> to vector<8x32xf32>
    %456 = vector.broadcast %cst_194 : f32 to vector<8x32xf32>
    %457 = arith.select %453, %455, %456 : vector<8x32xi1>, vector<8x32xf32>
    %c1_i32_195 = arith.constant 1 : i32
    %458 = vector.broadcast %c1_i32_195 : i32 to vector<8x1xi32>
    %459 = arith.addi %435, %458 : vector<8x1xi32>
    %460 = vector.broadcast %459 : vector<8x1xi32> to vector<8x32xi32>
    %461 = arith.cmpi eq, %0, %460 : vector<8x32xi32>
    %cst_196 = arith.constant 0.000000e+00 : f32
    %462 = vector.shape_cast %451 : vector<8x1xf32> to vector<8x1xf32>
    %463 = vector.broadcast %462 : vector<8x1xf32> to vector<8x32xf32>
    %464 = vector.broadcast %cst_196 : f32 to vector<8x32xf32>
    %465 = arith.select %461, %463, %464 : vector<8x32xi1>, vector<8x32xf32>
    %466 = arith.addf %457, %465 : vector<8x32xf32>
    %c1_197 = arith.constant 1 : index
    %c0_198 = arith.constant 0 : index
    %c32_199 = arith.constant 32 : index
    %467 = vector.load %arg7[%c1_197, %c0_198, %c32_199] : memref<2x8x128xf32, #tpu.memory_space<vmem>>, vector<1x8x32xf32>
    %468 = vector.shape_cast %467 : vector<1x8x32xf32> to vector<8x32xf32>
    %469 = vector.shape_cast %466 : vector<8x32xf32> to vector<1x8x32xf32>
    tpu.vector_store %arg7[%c1_197, %c0_198, %c32_199], %469 {strides = array<i32>} : memref<2x8x128xf32, #tpu.memory_space<vmem>>, vector<1x8x32xf32>,
    %c2_200 = arith.constant 2 : index
    %c0_201 = arith.constant 0 : index
    %c0_202 = arith.constant 0 : index
    %470 = vector.load %arg4[%c2_200, %c0_201, %c0_202] : memref<4x3x32xf32, #tpu.memory_space<vmem>>, vector<1x3x32xf32>
    %471 = vector.shape_cast %470 : vector<1x3x32xf32> to vector<3x32xf32>
    %cst_203 = arith.constant dense<0.000000e+00> : vector<32x32xf32>
    %472 = tpu.matmul %318, %471, %cst_203 {dimension_numbers = #tpu.dot_dimension_numbers<[1], [0], [0], [1], [0, 0, 1, 1], [], []>} : vector<32x3xf32>, vector<3x32xf32>, vector<32x32xf32> -> vector<32x32xf32>
    %c1_204 = arith.constant 1 : index
    %c64_205 = arith.constant 64 : index
    %c0_206 = arith.constant 0 : index
    %473 = vector.load %arg8[%c1_204, %c64_205, %c0_206] : memref<2x128x32xf32, #tpu.memory_space<vmem>>, vector<1x32x32xf32>
    %474 = vector.shape_cast %473 : vector<1x32x32xf32> to vector<32x32xf32>
    %475 = vector.shape_cast %472 : vector<32x32xf32> to vector<1x32x32xf32>
    tpu.vector_store %arg8[%c1_204, %c64_205, %c0_206], %475 {strides = array<i32>} : memref<2x128x32xf32, #tpu.memory_space<vmem>>, vector<1x32x32xf32>,
    %476 = vector.extract_strided_slice %323 {offsets = [0, 4], sizes = [8, 1], strides = [1, 1]} : vector<8x8xf32> to vector<8x1xf32>
    %477 = vector.extract_strided_slice %323 {offsets = [0, 5], sizes = [8, 1], strides = [1, 1]} : vector<8x8xf32> to vector<8x1xf32>
    %478 = math.floor %476 : vector<8x1xf32>
    %479 = arith.subf %476, %478 : vector<8x1xf32>
    %cst_207 = arith.constant 0.000000e+00 : f32
    %480 = vector.broadcast %cst_207 : f32 to vector<8x1xf32>
    %481 = arith.cmpf oeq, %478, %480 : vector<8x1xf32>
    %cst_208 = arith.constant 1.000000e+00 : f32
    %482 = vector.broadcast %cst_208 : f32 to vector<8x1xf32>
    %483 = arith.subf %482, %479 : vector<8x1xf32>
    %cst_209 = arith.constant 0.000000e+00 : f32
    %484 = vector.broadcast %cst_209 : f32 to vector<8x1xf32>
    %485 = arith.select %481, %483, %484 : vector<8x1xi1>, vector<8x1xf32>
    %cst_210 = arith.constant -1.000000e+00 : f32
    %486 = vector.broadcast %cst_210 : f32 to vector<8x1xf32>
    %487 = arith.cmpf oeq, %478, %486 : vector<8x1xf32>
    %cst_211 = arith.constant 0.000000e+00 : f32
    %488 = vector.broadcast %cst_211 : f32 to vector<8x1xf32>
    %489 = arith.select %487, %479, %488 : vector<8x1xi1>, vector<8x1xf32>
    %490 = arith.addf %485, %489 : vector<8x1xf32>
    %cst_212 = arith.constant -1.000000e+00 : f32
    %491 = vector.broadcast %cst_212 : f32 to vector<8x1xf32>
    %492 = arith.cmpf ogt, %476, %491 : vector<8x1xf32>
    %cst_213 = arith.constant 1.000000e+00 : f32
    %493 = vector.broadcast %cst_213 : f32 to vector<8x1xf32>
    %494 = arith.cmpf olt, %476, %493 : vector<8x1xf32>
    %495 = arith.andi %492, %494 : vector<8x1xi1>
    %cst_214 = arith.constant 0.000000e+00 : f32
    %496 = vector.broadcast %cst_214 : f32 to vector<8x1xf32>
    %497 = arith.select %495, %490, %496 : vector<8x1xi1>, vector<8x1xf32>
    %cst_215 = arith.constant 2.000000e+00 : f32
    %498 = vector.broadcast %cst_215 : f32 to vector<8x1xf32>
    %499 = arith.addf %4, %498 : vector<8x1xf32>
    %500 = arith.addf %499, %477 : vector<8x1xf32>
    %cst_216 = arith.constant -1.000000e+00 : f32
    %501 = vector.broadcast %cst_216 : f32 to vector<8x1xf32>
    %502 = arith.cmpf ogt, %500, %501 : vector<8x1xf32>
    %cst_217 = arith.constant 3.200000e+01 : f32
    %503 = vector.broadcast %cst_217 : f32 to vector<8x1xf32>
    %504 = arith.cmpf olt, %500, %503 : vector<8x1xf32>
    %505 = arith.andi %502, %504 : vector<8x1xi1>
    %506 = math.floor %500 : vector<8x1xf32>
    %507 = arith.subf %500, %506 : vector<8x1xf32>
    %508 = arith.fptosi %506 : vector<8x1xf32> to vector<8x1xi32>
    %c0_i32_218 = arith.constant 0 : i32
    %509 = vector.broadcast %c0_i32_218 : i32 to vector<8x1xi32>
    %510 = arith.cmpi sge, %508, %509 : vector<8x1xi32>
    %511 = arith.andi %510, %505 : vector<8x1xi1>
    %cst_219 = arith.constant 1.000000e+00 : f32
    %512 = vector.broadcast %cst_219 : f32 to vector<8x1xf32>
    %513 = arith.subf %512, %507 : vector<8x1xf32>
    %cst_220 = arith.constant 0.000000e+00 : f32
    %514 = vector.broadcast %cst_220 : f32 to vector<8x1xf32>
    %515 = arith.select %511, %513, %514 : vector<8x1xi1>, vector<8x1xf32>
    %516 = arith.mulf %515, %497 : vector<8x1xf32>
    %c1_i32_221 = arith.constant 1 : i32
    %517 = vector.broadcast %c1_i32_221 : i32 to vector<8x1xi32>
    %518 = arith.addi %508, %517 : vector<8x1xi32>
    %c31_i32_222 = arith.constant 31 : i32
    %519 = vector.broadcast %c31_i32_222 : i32 to vector<8x1xi32>
    %520 = arith.cmpi sle, %518, %519 : vector<8x1xi32>
    %521 = arith.andi %520, %505 : vector<8x1xi1>
    %cst_223 = arith.constant 0.000000e+00 : f32
    %522 = vector.broadcast %cst_223 : f32 to vector<8x1xf32>
    %523 = arith.select %521, %507, %522 : vector<8x1xi1>, vector<8x1xf32>
    %524 = arith.mulf %523, %497 : vector<8x1xf32>
    %525 = vector.broadcast %508 : vector<8x1xi32> to vector<8x32xi32>
    %526 = arith.cmpi eq, %0, %525 : vector<8x32xi32>
    %cst_224 = arith.constant 0.000000e+00 : f32
    %527 = vector.shape_cast %516 : vector<8x1xf32> to vector<8x1xf32>
    %528 = vector.broadcast %527 : vector<8x1xf32> to vector<8x32xf32>
    %529 = vector.broadcast %cst_224 : f32 to vector<8x32xf32>
    %530 = arith.select %526, %528, %529 : vector<8x32xi1>, vector<8x32xf32>
    %c1_i32_225 = arith.constant 1 : i32
    %531 = vector.broadcast %c1_i32_225 : i32 to vector<8x1xi32>
    %532 = arith.addi %508, %531 : vector<8x1xi32>
    %533 = vector.broadcast %532 : vector<8x1xi32> to vector<8x32xi32>
    %534 = arith.cmpi eq, %0, %533 : vector<8x32xi32>
    %cst_226 = arith.constant 0.000000e+00 : f32
    %535 = vector.shape_cast %524 : vector<8x1xf32> to vector<8x1xf32>
    %536 = vector.broadcast %535 : vector<8x1xf32> to vector<8x32xf32>
    %537 = vector.broadcast %cst_226 : f32 to vector<8x32xf32>
    %538 = arith.select %534, %536, %537 : vector<8x32xi1>, vector<8x32xf32>
    %539 = arith.addf %530, %538 : vector<8x32xf32>
    %c1_227 = arith.constant 1 : index
    %c0_228 = arith.constant 0 : index
    %c64_229 = arith.constant 64 : index
    %540 = vector.load %arg7[%c1_227, %c0_228, %c64_229] : memref<2x8x128xf32, #tpu.memory_space<vmem>>, vector<1x8x32xf32>
    %541 = vector.shape_cast %540 : vector<1x8x32xf32> to vector<8x32xf32>
    %542 = vector.shape_cast %539 : vector<8x32xf32> to vector<1x8x32xf32>
    tpu.vector_store %arg7[%c1_227, %c0_228, %c64_229], %542 {strides = array<i32>} : memref<2x8x128xf32, #tpu.memory_space<vmem>>, vector<1x8x32xf32>,
    %c3_230 = arith.constant 3 : index
    %c0_231 = arith.constant 0 : index
    %c0_232 = arith.constant 0 : index
    %543 = vector.load %arg4[%c3_230, %c0_231, %c0_232] : memref<4x3x32xf32, #tpu.memory_space<vmem>>, vector<1x3x32xf32>
    %544 = vector.shape_cast %543 : vector<1x3x32xf32> to vector<3x32xf32>
    %cst_233 = arith.constant dense<0.000000e+00> : vector<32x32xf32>
    %545 = tpu.matmul %318, %544, %cst_233 {dimension_numbers = #tpu.dot_dimension_numbers<[1], [0], [0], [1], [0, 0, 1, 1], [], []>} : vector<32x3xf32>, vector<3x32xf32>, vector<32x32xf32> -> vector<32x32xf32>
    %c1_234 = arith.constant 1 : index
    %c96_235 = arith.constant 96 : index
    %c0_236 = arith.constant 0 : index
    %546 = vector.load %arg8[%c1_234, %c96_235, %c0_236] : memref<2x128x32xf32, #tpu.memory_space<vmem>>, vector<1x32x32xf32>
    %547 = vector.shape_cast %546 : vector<1x32x32xf32> to vector<32x32xf32>
    %548 = vector.shape_cast %545 : vector<32x32xf32> to vector<1x32x32xf32>
    tpu.vector_store %arg8[%c1_234, %c96_235, %c0_236], %548 {strides = array<i32>} : memref<2x128x32xf32, #tpu.memory_space<vmem>>, vector<1x32x32xf32>,
    %549 = vector.extract_strided_slice %323 {offsets = [0, 6], sizes = [8, 1], strides = [1, 1]} : vector<8x8xf32> to vector<8x1xf32>
    %550 = vector.extract_strided_slice %323 {offsets = [0, 7], sizes = [8, 1], strides = [1, 1]} : vector<8x8xf32> to vector<8x1xf32>
    %551 = math.floor %549 : vector<8x1xf32>
    %552 = arith.subf %549, %551 : vector<8x1xf32>
    %cst_237 = arith.constant 0.000000e+00 : f32
    %553 = vector.broadcast %cst_237 : f32 to vector<8x1xf32>
    %554 = arith.cmpf oeq, %551, %553 : vector<8x1xf32>
    %cst_238 = arith.constant 1.000000e+00 : f32
    %555 = vector.broadcast %cst_238 : f32 to vector<8x1xf32>
    %556 = arith.subf %555, %552 : vector<8x1xf32>
    %cst_239 = arith.constant 0.000000e+00 : f32
    %557 = vector.broadcast %cst_239 : f32 to vector<8x1xf32>
    %558 = arith.select %554, %556, %557 : vector<8x1xi1>, vector<8x1xf32>
    %cst_240 = arith.constant -1.000000e+00 : f32
    %559 = vector.broadcast %cst_240 : f32 to vector<8x1xf32>
    %560 = arith.cmpf oeq, %551, %559 : vector<8x1xf32>
    %cst_241 = arith.constant 0.000000e+00 : f32
    %561 = vector.broadcast %cst_241 : f32 to vector<8x1xf32>
    %562 = arith.select %560, %552, %561 : vector<8x1xi1>, vector<8x1xf32>
    %563 = arith.addf %558, %562 : vector<8x1xf32>
    %cst_242 = arith.constant -1.000000e+00 : f32
    %564 = vector.broadcast %cst_242 : f32 to vector<8x1xf32>
    %565 = arith.cmpf ogt, %549, %564 : vector<8x1xf32>
    %cst_243 = arith.constant 1.000000e+00 : f32
    %566 = vector.broadcast %cst_243 : f32 to vector<8x1xf32>
    %567 = arith.cmpf olt, %549, %566 : vector<8x1xf32>
    %568 = arith.andi %565, %567 : vector<8x1xi1>
    %cst_244 = arith.constant 0.000000e+00 : f32
    %569 = vector.broadcast %cst_244 : f32 to vector<8x1xf32>
    %570 = arith.select %568, %563, %569 : vector<8x1xi1>, vector<8x1xf32>
    %cst_245 = arith.constant 3.000000e+00 : f32
    %571 = vector.broadcast %cst_245 : f32 to vector<8x1xf32>
    %572 = arith.addf %4, %571 : vector<8x1xf32>
    %573 = arith.addf %572, %550 : vector<8x1xf32>
    %cst_246 = arith.constant -1.000000e+00 : f32
    %574 = vector.broadcast %cst_246 : f32 to vector<8x1xf32>
    %575 = arith.cmpf ogt, %573, %574 : vector<8x1xf32>
    %cst_247 = arith.constant 3.200000e+01 : f32
    %576 = vector.broadcast %cst_247 : f32 to vector<8x1xf32>
    %577 = arith.cmpf olt, %573, %576 : vector<8x1xf32>
    %578 = arith.andi %575, %577 : vector<8x1xi1>
    %579 = math.floor %573 : vector<8x1xf32>
    %580 = arith.subf %573, %579 : vector<8x1xf32>
    %581 = arith.fptosi %579 : vector<8x1xf32> to vector<8x1xi32>
    %c0_i32_248 = arith.constant 0 : i32
    %582 = vector.broadcast %c0_i32_248 : i32 to vector<8x1xi32>
    %583 = arith.cmpi sge, %581, %582 : vector<8x1xi32>
    %584 = arith.andi %583, %578 : vector<8x1xi1>
    %cst_249 = arith.constant 1.000000e+00 : f32
    %585 = vector.broadcast %cst_249 : f32 to vector<8x1xf32>
    %586 = arith.subf %585, %580 : vector<8x1xf32>
    %cst_250 = arith.constant 0.000000e+00 : f32
    %587 = vector.broadcast %cst_250 : f32 to vector<8x1xf32>
    %588 = arith.select %584, %586, %587 : vector<8x1xi1>, vector<8x1xf32>
    %589 = arith.mulf %588, %570 : vector<8x1xf32>
    %c1_i32_251 = arith.constant 1 : i32
    %590 = vector.broadcast %c1_i32_251 : i32 to vector<8x1xi32>
    %591 = arith.addi %581, %590 : vector<8x1xi32>
    %c31_i32_252 = arith.constant 31 : i32
    %592 = vector.broadcast %c31_i32_252 : i32 to vector<8x1xi32>
    %593 = arith.cmpi sle, %591, %592 : vector<8x1xi32>
    %594 = arith.andi %593, %578 : vector<8x1xi1>
    %cst_253 = arith.constant 0.000000e+00 : f32
    %595 = vector.broadcast %cst_253 : f32 to vector<8x1xf32>
    %596 = arith.select %594, %580, %595 : vector<8x1xi1>, vector<8x1xf32>
    %597 = arith.mulf %596, %570 : vector<8x1xf32>
    %598 = vector.broadcast %581 : vector<8x1xi32> to vector<8x32xi32>
    %599 = arith.cmpi eq, %0, %598 : vector<8x32xi32>
    %cst_254 = arith.constant 0.000000e+00 : f32
    %600 = vector.shape_cast %589 : vector<8x1xf32> to vector<8x1xf32>
    %601 = vector.broadcast %600 : vector<8x1xf32> to vector<8x32xf32>
    %602 = vector.broadcast %cst_254 : f32 to vector<8x32xf32>
    %603 = arith.select %599, %601, %602 : vector<8x32xi1>, vector<8x32xf32>
    %c1_i32_255 = arith.constant 1 : i32
    %604 = vector.broadcast %c1_i32_255 : i32 to vector<8x1xi32>
    %605 = arith.addi %581, %604 : vector<8x1xi32>
    %606 = vector.broadcast %605 : vector<8x1xi32> to vector<8x32xi32>
    %607 = arith.cmpi eq, %0, %606 : vector<8x32xi32>
    %cst_256 = arith.constant 0.000000e+00 : f32
    %608 = vector.shape_cast %597 : vector<8x1xf32> to vector<8x1xf32>
    %609 = vector.broadcast %608 : vector<8x1xf32> to vector<8x32xf32>
    %610 = vector.broadcast %cst_256 : f32 to vector<8x32xf32>
    %611 = arith.select %607, %609, %610 : vector<8x32xi1>, vector<8x32xf32>
    %612 = arith.addf %603, %611 : vector<8x32xf32>
    %c1_257 = arith.constant 1 : index
    %c0_258 = arith.constant 0 : index
    %c96_259 = arith.constant 96 : index
    %613 = vector.load %arg7[%c1_257, %c0_258, %c96_259] : memref<2x8x128xf32, #tpu.memory_space<vmem>>, vector<1x8x32xf32>
    %614 = vector.shape_cast %613 : vector<1x8x32xf32> to vector<8x32xf32>
    %615 = vector.shape_cast %612 : vector<8x32xf32> to vector<1x8x32xf32>
    tpu.vector_store %arg7[%c1_257, %c0_258, %c96_259], %615 {strides = array<i32>} : memref<2x8x128xf32, #tpu.memory_space<vmem>>, vector<1x8x32xf32>,
    %c1_260 = arith.constant 1 : index
    %c0_261 = arith.constant 0 : index
    %c0_262 = arith.constant 0 : index
    %616 = vector.load %arg7[%c1_260, %c0_261, %c0_262] : memref<2x8x128xf32, #tpu.memory_space<vmem>>, vector<1x8x128xf32>
    %617 = vector.shape_cast %616 : vector<1x8x128xf32> to vector<8x128xf32>
    %c1_263 = arith.constant 1 : index
    %c0_264 = arith.constant 0 : index
    %c0_265 = arith.constant 0 : index
    %618 = vector.load %arg8[%c1_263, %c0_264, %c0_265] : memref<2x128x32xf32, #tpu.memory_space<vmem>>, vector<1x128x32xf32>
    %619 = vector.shape_cast %618 : vector<1x128x32xf32> to vector<128x32xf32>
    %cst_266 = arith.constant dense<0.000000e+00> : vector<8x32xf32>
    %620 = tpu.matmul %617, %619, %cst_266 {dimension_numbers = #tpu.dot_dimension_numbers<[1], [0], [0], [1], [0, 0, 1, 1], [], []>} : vector<8x128xf32>, vector<128x32xf32>, vector<8x32xf32> -> vector<8x32xf32>
    %621 = vector.broadcast %7 : vector<1x32xf32> to vector<8x32xf32>
    %622 = arith.addf %620, %621 : vector<8x32xf32>
    %c1_267 = arith.constant 1 : index
    %c0_268 = arith.constant 0 : index
    %c0_269 = arith.constant 0 : index
    %623 = vector.load %arg6[%c1_267, %c0_268, %c0_269] : memref<2x8x32xf32, #tpu.memory_space<vmem>>, vector<1x8x32xf32>
    %624 = vector.shape_cast %623 : vector<1x8x32xf32> to vector<8x32xf32>
    %625 = vector.shape_cast %622 : vector<8x32xf32> to vector<1x8x32xf32>
    tpu.vector_store %arg6[%c1_267, %c0_268, %c0_269], %625 {strides = array<i32>} : memref<2x8x32xf32, #tpu.memory_space<vmem>>, vector<1x8x32xf32>,
    return
  }
}

</mosaic_0001>

<bundles_post_ra>
// kernel: deformable_token_embedding.1
= control target key start
LH: loop header
LB: loop body
LE: loop exit
PB: predicated region body
PF: predicated region fallthrough
CT: control target
= control target key end

     0   :  { %vm49_vm0 = vcmask 1043456   ;;  %v1909_v1 = vmov 0.0   ;;  %vm1910_vm1 = vmmov 0   ;;  %s2486_s0 = inlined_call_operand.vmem [shape: f32[2,32,3], index: 0, kind: input, shape index: {}]   ;;  %s2487_s1 = inlined_call_operand.vmem [shape: f32[2,8,12], index: 1, kind: input, shape index: {}]   ;;  %s2488_s2 = inlined_call_operand.vmem [shape: f32[12,8], index: 2, kind: input, shape index: {}]   ;;  %s2489_s3 = inlined_call_operand.vmem [shape: f32[1,8], index: 3, kind: input, shape index: {}]   ;;  %s2490_s4 = inlined_call_operand.vmem [shape: f32[4,3,32], index: 4, kind: input, shape index: {}]   ;;  %s2491_s5 = inlined_call_operand.vmem [shape: f32[1,32], index: 5, kind: input, shape index: {}]   ;;  %s2492_s6 = inlined_call_operand.hbm [shape: f32[2,8,32], index: 6, kind: output, shape index: {}]  }
   0x1   :  { %v31_v0 = vld [vmem:[%s2488_s2 + $0x8] sm:$0xf]  ;;  %1690 = vmatprep.subr.mxu1 %v1909_v1  ;;  %v30_v2 = vld [vmem:[%s2488_s2] sm:$0xff]  ;;  %1694 = vmatprep.mubr.msk.f32.mxu1 %vm1910_vm1, %v1909_v1 }
   0x2   :  { %11 = vsyncpa [#allocation5], 0  ;;  %1691 = vmatpush3.msk.msra.mxu1 %vm49_vm0, %v31_v0  ;;  %v38_v3 = vld [vmem:[%s2487_s1] sm:$0xff]  ;;  %vm45_vm2 = vcmask 97280   ;;  %v1911_v4 = vmov 7   ;;  %v1912_v5 = vmov 3   ;;  %v24_v12 = vlaneseq }
   0x3   :  { %1692 = vmatprep.subr.mxu1 %v1909_v1  ;;  %1869 = vset.pattern.permute.xlu1 %v1911_v4  ;;  %vm137_vm3 = vcmask 1042432   ;;  %v1573_v6 = vld [vmem:[%s2490_s4 + $0xc] sm:$0x7]  ;;  %v1980_v7 = vld [vmem:[%s2486_s0] sm:$0xff]  ;;  %vm124_vm4 = vcmask 23552   ;;  %v1993_v9 = vld [vmem:[%s2486_s0 + $0x10] sm:$0xff] }
   0x4   :  { %1693 = vmatpush3.msra.mxu1 %v30_v2  ;;  %1867 = vset.pattern.permute.xlu0 %v1912_v5  ;;  %v1985_v8 = vld [vmem:[%s2486_s0 + $0x8] sm:$0xff]  ;;  %v2006_v10 = vld [vmem:[%s2486_s0 + $0x18] sm:$0xff]  ;;  %v27_v13 = vshrl.u32 %v24_v12, 7  ;;  %v2024_v16 = vld [vmem:[%s2489_s3] ss:$0 sm:$0xff]  ;;  %s1913_s3 = smov 1  }
   0x5   :  { %1695 = vmatmul.mubr.msk.f32.vlgmr.msra.gmra.mxu1 %vm45_vm2, %v38_v3  ;;  %1721 = vmatprep.subr.msk.mxu0 %vm137_vm3, %v1573_v6  ;;  %v1584_v11 = vld [vmem:[%s2487_s1 + $0x8] sm:$0xff]  ;;  %v123_v23 = vld [vmem:[%s2490_s4] sm:$0x7]  ;;  %v1561_v53 = vld [vmem:[%s2490_s4 + $0x4] sm:$0x7]  ;;  %v1914_v62 = vmov 5  }
   0x6   :  { %1723 = vmatprep.mubr.msk.f32.mxu0 %vm124_vm4, %v1980_v7  ;;  %1722 = vmatpush3.msk.msra.mxu0 %vm137_vm3, %v1573_v6  ;;  %v28_v14 = vcvt.s32.f32 %v27_v13  ;;  %v1567_v63 = vld [vmem:[%s2490_s4 + $0x8] sm:$0x7]  ;;  %s1916_s21 = smov 32   ;;  %s1917_s27 = smov 64  }
   0x7   :  { %1699 = vmatprep.mubr.msk.f32.mxu1 %vm124_vm4, %v1980_v7  ;;  %1724 = vmatmul.mubr.msk.f32.vlgmr.msra.gmra.mxu0 %vm124_vm4, %v1985_v8 }
   0x8   :  { %1764 = vmatprep.subr.mxu0 %v1909_v1  ;;  %1726 = vmatprep.mubr.msk.f32.mxu0 %vm124_vm4, %v1993_v9  ;;  %v2019_v15 = vmul.f32 4.0, %v28_v14 }
   0x9   :  { %1765 = vmatpush3.msk.msra.mxu0 %vm49_vm0, %v31_v0  ;;  %1697 = vmatprep.subr.msk.mxu1 %vm137_vm3, %v123_v23 }
   0xa   :  { %1766 = vmatprep.subr.mxu0 %v1909_v1  ;;  %v2027_v17 = vadd.f32 3.0, %v2019_v15  ;;  %v2030_v19 = vadd.f32 1.0, %v2019_v15  ;;  %v2033_v20 = vadd.f32 2.0, %v2019_v15  ;;  %1698 = vmatpush3.msk.msra.mxu1 %vm137_vm3, %v123_v23 }
   0xb   :  { %1767 = vmatpush3.msra.mxu0 %v30_v2  ;;  %1700 = vmatmul.mubr.msk.f32.vlgmr.msra.gmra.mxu1 %vm124_vm4, %v1985_v8 }
   0xc   :  { %1727 = vmatmul.mubr.msk.f32.gmra.mxu0 %vm124_vm4, %v2006_v10  ;;  %1702 = vmatprep.mubr.msk.f32.mxu1 %vm124_vm4, %v1993_v9 }
   0xd   :  { %1768 = vmatprep.mubr.msk.f32.mxu0 %vm1910_vm1, %v1909_v1  ;;  %1705 = vmatprep.subr.msk.mxu1 %vm137_vm3, %v1561_v53 }
   0xe   :  { %1706 = vmatpush3.msk.msra.mxu1 %vm137_vm3, %v1561_v53 }
   0xf   :  { %1703 = vmatmul.mubr.msk.f32.gmra.mxu1 %vm124_vm4, %v2006_v10  ;;  %1713 = vmatprep.subr.msk.mxu1 %vm137_vm3, %v1567_v63 }
  0x10   :  { %1769 = vmatmul.mubr.msk.f32.vlgmr.msra.gmra.mxu0 %vm45_vm2, %v1584_v11  ;;  %1707 = vmatprep.mubr.msk.f32.mxu1 %vm124_vm4, %v1980_v7 }
  0x13   :  { %1708 = vmatmul.mubr.msk.f32.vlgmr.msra.gmra.mxu1 %vm124_vm4, %v1985_v8 }
  0x14   :  { %1710 = vmatprep.mubr.msk.f32.mxu1 %vm124_vm4, %v1993_v9  ;;  %1714 = vmatpush3.msk.msra.mxu1 %vm137_vm3, %v1567_v63 }
  0x15   :  { %1729 = vmatprep.subr.mxu1 %v1909_v1 }
  0x17   :  { %1711 = vmatmul.mubr.msk.f32.gmra.mxu1 %vm124_vm4, %v2006_v10 }
  0x18   :  { %1715 = vmatprep.mubr.msk.f32.mxu1 %vm124_vm4, %v1980_v7 }
  0x1b   :  { %1716 = vmatmul.mubr.msk.f32.vlgmr.msra.gmra.mxu1 %vm124_vm4, %v1985_v8 }
  0x1c   :  { %1718 = vmatprep.mubr.msk.f32.mxu1 %vm124_vm4, %v1993_v9 }
  0x1f   :  { %1719 = vmatmul.mubr.msk.f32.gmra.mxu1 %vm124_vm4, %v2006_v10 }
  0x20   :  { %1761 = vmatprep.mubr.msk.f32.mxu1 %vm1910_vm1, %v1909_v1 }
  0xc5   :  { %v119_v18 = vpop.f32.mrf.mxu1 }
  0xc6   :  { %v2036_v21 = vadd.f32 %v2024_v16, %v119_v18 }
  0xc7   :  { %v1696_v22 = vpop.f32.mrf.mxu1  ;;  %v1725_v3 = vpop.f32.mrf.mxu0 }
  0xc8   :  { %v2043_v24 = vadd.f32 %v2027_v17, %v2036_v21  ;;  %v231_v25 = vfloor.f32 %v2036_v21  ;;  %vm239_vm5 = vcmp.gt.f32.partialorder %v2036_v21, -1.0  ;;  %vm240_vm6 = vcmp.lt.f32.partialorder %v2036_v21, 1.0 }
  0xc9   :  { %v382_v26 = vadd.f32 %v2030_v19, %v2036_v21  ;;  %v521_v27 = vadd.f32 %v2033_v20, %v2036_v21  ;;  %vm241_vm13 = vmand %vm239_vm5, %vm240_vm6  ;;  %v636_v6 = vpop.f32.mrf.mxu0  ;;  %v244_v10 = vadd.f32 %v2036_v21, %v2019_v15 }
  0xca   :  { %v664_v28 = vfloor.f32 %v2043_v24  ;;  %v232_v29 = vsub.f32 %v2036_v21, %v231_v25  ;;  %vm233_vm7 = vcmp.eq.f32.partialorder %v231_v25, 0.0  ;;  %vm236_vm8 = vcmp.eq.f32.partialorder %v231_v25, -1.0 }
  0xcb   :  { %v386_v30 = vfloor.f32 %v382_v26  ;;  %v525_v31 = vfloor.f32 %v521_v27  ;;  %vm522_vm9 = vcmp.gt.f32.partialorder %v521_v27, -1.0  ;;  %vm523_vm10 = vcmp.lt.f32.partialorder %v521_v27, 32.0 }
  0xcc   :  { %v1844_v32 = vtrunc.f32 %v664_v28  ;;  %v2061_v33 = vsub.f32 %v2043_v24, %v664_v28  ;;  %v234_v34 = vsub.f32 1.0, %v232_v29  ;;  %v237_v35 = vsel %vm236_vm8, %v232_v29, 0.0  ;;  %vm2078_vm14 = vmand %vm522_vm9, %vm523_vm10  ;;  %v1728_v7 = vpop.f32.mrf.mxu0 }
  0xcd   :  { %v1840_v36 = vtrunc.f32 %v386_v30  ;;  %v1842_v37 = vtrunc.f32 %v525_v31  ;;  %v2063_v38 = vsub.f32 %v521_v27, %v525_v31  ;;  %vm383_vm11 = vcmp.gt.f32.partialorder %v382_v26, -1.0 }
  0xce   :  { %v1845_v39 = vcvt.f32.s32 %v1844_v32  ;;  %v235_v40 = vsel %vm233_vm7, %v234_v34, 0.0  ;;  %vm384_vm12 = vcmp.lt.f32.partialorder %v382_v26, 32.0  ;;  %v2066_v41 = vsub.f32 %v382_v26, %v386_v30  ;;  %v646_v8 = vpop.f32.mrf.mxu0 }
  0xcf   :  { %v238_v42 = vadd.f32 %v237_v35, %v235_v40  ;;  %v1841_v43 = vcvt.f32.s32 %v1840_v36  ;;  %v1843_v44 = vcvt.f32.s32 %v1842_v37  ;;  %vm2084_vm15 = vmand %vm383_vm11, %vm384_vm12  ;;  %v530_v52 = vsub.f32 1.0, %v2063_v38 }
  0xd0   :  { %678 = vperm.xlu1 %1869, %v1845_v39   ;;  %v391_v46 = vsub.f32 1.0, %v2066_v41  ;;  %v2091_v51 = vadd.s32 1, %v1845_v39  ;;  %vm661_vm6 = vcmp.gt.f32.partialorder %v2043_v24, -1.0  ;;  %vm662_vm10 = vcmp.lt.f32.partialorder %v2043_v24, 32.0  ;;  %v874_v9 = vpop.f32.mrf.mxu0 }
  0xd1   :  { %v242_v47 = vsel %vm241_vm13, %v238_v42, 0.0  ;;  %v394_v48 = vadd.s32 1, %v1841_v43  ;;  %v533_v49 = vadd.s32 1, %v1843_v44  ;;  %vm389_vm0 = vcmp.ge.s32.totalorder %v1841_v43, 0 }
  0xd2   :  { %256 = vrot.lane.b32.xlu0 %v242_v47, %s1913_s3  ;;  %vm390_vm2 = vmand %vm389_vm0, %vm2084_vm15  ;;  %vm528_vm5 = vcmp.ge.s32.totalorder %v1843_v44, 0  ;;  %vm667_vm12 = vcmp.ge.s32.totalorder %v1845_v39, 0  ;;  %v669_v60 = vsub.f32 1.0, %v2061_v33  ;;  %v1770_v11 = vpop.f32.mrf.mxu0  ;;  %v248_v14 = vfloor.f32 %v244_v10 }
  0xd3   :  { %vm395_vm7 = vcmp.le.s32.totalorder %v394_v48, 31  ;;  %vm534_vm8 = vcmp.le.s32.totalorder %v533_v49, 31  ;;  %v392_v54 = vsel %vm390_vm2, %v391_v46, 0.0  ;;  %vm529_vm9 = vmand %vm528_vm5, %vm2078_vm14  ;;  %vm226_vm5 = vcmask 261120  }
  0xd4   :  { %1870 = vset.pattern.permute.xlu1 %v1912_v5  ;;  %vm2105_vm11 = vmand %vm534_vm8, %vm2078_vm14  ;;  %v2109_v56 = vsel %vm529_vm9, %v530_v52, 0.0  ;;  %656 = vst.msk [vmem:[#allocation3 + $0x68] sm:$0xff] %vm226_vm5, %v1725_v3  ;;  %v1838_v18 = vtrunc.f32 %v248_v14  ;;  %v2179_v30 = vadd.f32 %v2024_v16, %v874_v9  ;;  %v1915_v35 = vmov 1  }
  0xd5   :  { %410 = vperm.xlu1 %1870, %v394_v48   ;;  %v536_v57 = vsel %vm2105_vm11, %v2063_v38, 0.0  ;;  %vm2117_vm13 = vmand %vm395_vm7, %vm2084_vm15  ;;  %vm673_vm15 = vcmp.le.s32.totalorder %v2091_v51, 31  ;;  %655 = vst.msk [vmem:[#allocation3 + $0x60] sm:$0xff] %vm226_vm5, %v636_v6  ;;  %vm246_vm7 = vcmp.lt.f32.partialorder %v244_v10, 32.0  ;;  %v249_v36 = vsub.f32 %v244_v10, %v248_v14 }
  0xd6   :  { %400 = vperm.xlu0 %1867, %v1841_v43   ;;  %v397_v59 = vsel %vm2117_vm13, %v2066_v41, 0.0  ;;  %vm663_vm14 = vmand %vm661_vm6, %vm662_vm10  ;;  %658 = vst.msk [vmem:[#allocation3 + $0x78] sm:$0xff] %vm226_vm5, %v1728_v7  ;;  %v1839_v25 = vcvt.f32.s32 %v1838_v18  ;;  %vm245_vm6 = vcmp.gt.f32.partialorder %v244_v10, -1.0  ;;  %v1133_v16 = vadd.f32 %v2179_v30, %v2030_v19 }
  0xd7   :  { %vm668_vm0 = vmand %vm667_vm12, %vm663_vm14  ;;  %657 = vst.msk [vmem:[#allocation3 + $0x70] sm:$0xff] %vm226_vm5, %v646_v8  ;;  %v1269_v34 = vadd.f32 %v2179_v30, %v2033_v20 }
  0xd8   :  { %v2132_v61 = vsel %vm668_vm0, %v669_v60, 0.0  ;;  %vm2141_vm2 = vmand %vm673_vm15, %vm663_vm14  ;;  %v2174_v28 = vadd.s32 1, %v1839_v25  ;;  %v1137_v37 = vfloor.f32 %v1133_v16  ;;  %vm251_vm11 = vcmp.ge.s32.totalorder %v1839_v25, 0 }
  0xd9   :  { %1871 = vset.pattern.permute.xlu1 %v1914_v62  ;;  %v675_v2 = vsel %vm2141_vm2, %v2061_v33, 0.0  ;;  %vm2187_vm9 = vmand %vm245_vm6, %vm246_vm7  ;;  %v1273_v38 = vfloor.f32 %v1269_v34  ;;  %vm1270_vm12 = vcmp.gt.f32.partialorder %v1269_v34, -1.0  ;;  %vm1271_vm13 = vcmp.lt.f32.partialorder %v1269_v34, 32.0 }
  0xda   :  { %1868 = vset.pattern.permute.xlu0 %v1914_v62  ;;  %549 = vperm.xlu1 %1871, %v533_v49   ;;  %vm261_vm8 = vcmp.le.s32.totalorder %v2174_v28, 31  ;;  %v1848_v40 = vtrunc.f32 %v1137_v37  ;;  %vm2218_vm14 = vmand %vm1270_vm12, %vm1271_vm13  ;;  %vm1134_vm15 = vcmp.gt.f32.partialorder %v1133_v16, -1.0  ;;  %vm1135_vm6 = vcmp.lt.f32.partialorder %v1133_v16, 32.0 }
  0xdb   :  { %539 = vperm.xlu0 %1868, %v1843_v44   ;;  %v718_v23 = vld [vmem:[#allocation3 + $0x68] sm:$0xff]  ;;  %vm262_vm10 = vmand %vm261_vm8, %vm2187_vm9  ;;  %v1850_v41 = vtrunc.f32 %v1273_v38  ;;  %v2222_v48 = vsub.f32 %v1269_v34, %v1273_v38  ;;  %v2232_v33 = vsub.f32 %v1133_v16, %v1137_v37 }
  0xdc   :  { %v717_v21 = vld [vmem:[#allocation3 + $0x60] sm:$0xff]  ;;  %v263_v39 = vsel %vm262_vm10, %v249_v36, 0.0  ;;  %v2203_v42 = vcvt.f32.s32 %v1848_v40  ;;  %vm2226_vm0 = vmand %vm251_vm11, %vm2187_vm9 }
  0xdd   :  { %v720_v13 = vld [vmem:[#allocation3 + $0x78] sm:$0xff]  ;;  %v2205_v43 = vcvt.f32.s32 %v1850_v41  ;;  %vm1136_vm9 = vmand %vm1134_vm15, %vm1135_vm6  ;;  %v1142_v52 = vsub.f32 1.0, %v2232_v33  ;;  %v1278_v53 = vsub.f32 1.0, %v2222_v48 }
  0xde   :  { %1872 = vset.pattern.permute.xlu1 %v1912_v5  ;;  %1730 = vmatpush3.msra.mxu1 %v720_v13  ;;  %v719_v22 = vld [vmem:[#allocation3 + $0x70] sm:$0xff]  ;;  %v2208_v44 = vadd.s32 1, %v2203_v42  ;;  %vm1140_vm7 = vcmp.ge.s32.totalorder %v2203_v42, 0 }
  0xdf   :  { %1731 = vmatprep.subr.mxu1 %v1909_v1  ;;  %v2216_v46 = vadd.s32 1, %v2205_v43  ;;  %vm1276_vm11 = vcmp.ge.s32.totalorder %v2205_v43, 0  ;;  %vm1141_vm12 = vmand %vm1140_vm7, %vm1136_vm9 }
  0xe0   :  { %1732 = vmatpush3.msra.mxu1 %v719_v22  ;;  %vm1146_vm8 = vcmp.le.s32.totalorder %v2208_v44, 31  ;;  %v2249_v55 = vsel %vm1141_vm12, %v1142_v52, 0.0  ;;  %vm1277_vm15 = vmand %vm1276_vm11, %vm2218_vm14  ;;  %vm993_vm11 = vcmp.lt.f32.partialorder %v2179_v30, 1.0 }
  0xe1   :  { %1733 = vmatprep.subr.mxu1 %v1909_v1  ;;  %vm1282_vm2 = vcmp.le.s32.totalorder %v2216_v46, 31  ;;  %vm2251_vm13 = vmand %vm1146_vm8, %vm1136_vm9  ;;  %vm992_vm9 = vcmp.gt.f32.partialorder %v2179_v30, -1.0 }
  0xe2   :  { %1734 = vmatpush3.msra.mxu1 %v718_v23  ;;  %vm2238_vm10 = vmand %vm1282_vm2, %vm2218_vm14 }
  0xe3   :  { %1735 = vmatprep.subr.mxu1 %v1909_v1  ;;  %vm994_vm12 = vmand %vm992_vm9, %vm993_vm11 }
  0xe4   :  { %1736 = vmatpush3.msra.mxu1 %v717_v21 }
  0xe5   :  { %1737 = vmatprep.subr.mxu1 %v1909_v1 }
 0x144   :  { %v2169_v24 = vpop.permute.xlu0 %256 }
 0x145   :  { %v537_v26 = vmul.f32 %v536_v57, %v2169_v24  ;;  %v393_v27 = vmul.f32 %v392_v54, %v2169_v24  ;;  %v398_v29 = vmul.f32 %v397_v59, %v2169_v24  ;;  %v532_v31 = vmul.f32 %v2109_v56, %v2169_v24 }
 0x146   :  { %v671_v19 = vmul.f32 %v2132_v61, %v2169_v24  ;;  %v264_v20 = vmul.f32 %v263_v39, %v2169_v24  ;;  %v676_v45 = vmul.f32 %v675_v2, %v2169_v24  ;;  %v253_v54 = vsub.f32 1.0, %v249_v36  ;;  %v1701_v61 = vpop.f32.mrf.mxu1 }
 0x147   :  { %554 = vperm.xlu0 %1868, %v537_v26   ;;  %405 = vperm.xlu1 %1872, %v393_v27   ;;  %v1148_v57 = vsel %vm2251_vm13, %v2232_v33, 0.0  ;;  %v2263_v59 = vsel %vm1277_vm15, %v1278_v53, 0.0  ;;  %228 = vst.msk [vmem:[#allocation3 + $0x8] sm:$0xff] %vm226_vm5, %v1701_v61  ;;  %v984_v36 = vfloor.f32 %v2179_v30  ;;  %v2295_v39 = vand.u32 127, %v24_v12 }
 0x148   :  { %v254_v58 = vsel %vm2226_vm0, %v253_v54, 0.0  ;;  %v207_v63 = vpop.f32.mrf.mxu1 }
 0x149   :  { %v259_v60 = vmul.f32 %v2169_v24, %v254_v58  ;;  %227 = vst.msk [vmem:[#allocation3] sm:$0xff] %vm226_vm5, %v207_v63  ;;  %v985_v38 = vsub.f32 %v2179_v30, %v984_v36  ;;  %vm986_vm2 = vcmp.eq.f32.partialorder %v984_v36, 0.0  ;;  %vm989_vm6 = vcmp.eq.f32.partialorder %v984_v36, -1.0  ;;  %v2311_v63 = vld [vmem:[%s2486_s0 + $0x20] sm:$0xff] }
 0x14a   :  { %v1704_v0 = vpop.f32.mrf.mxu1  ;;  %1773 = vmatprep.mubr.msk.f32.mxu0 %vm124_vm4, %v2311_v63 }
 0x14b   :  { %1874 = vset.pattern.permute.xlu0 %v1911_v4  ;;  %415 = vperm.xlu1 %1872, %v398_v29   ;;  %230 = vst.msk [vmem:[#allocation3 + $0x18] sm:$0xff] %vm226_vm5, %v1704_v0  ;;  %v990_v53 = vsel %vm989_vm6, %v985_v38, 0.0  ;;  %v2316_v0 = vld [vmem:[%s2486_s0 + $0x28] sm:$0xff]  ;;  %vm424_vm6 = vcmask 523520  }
 0x14c   :  { %688 = vperm.xlu0 %1874, %v2091_v51   ;;  %v1284_v51 = vsel %vm2238_vm10, %v2222_v48, 0.0  ;;  %v217_v2 = vpop.f32.mrf.mxu1 }
 0x14d   :  { %229 = vst.msk [vmem:[#allocation3 + $0x10] sm:$0xff] %vm226_vm5, %v217_v2 }
 0x14e   :  { %v1709_v3 = vpop.f32.mrf.mxu1 }
 0x14f   :  { %1873 = vset.pattern.permute.xlu1 %v1914_v62  ;;  %378 = vst.msk [vmem:[#allocation3 + $0x28] sm:$0xff] %vm226_vm5, %v1709_v3 }
 0x150   :  { %1876 = vset.pattern.permute.xlu0 %v1915_v35  ;;  %544 = vperm.xlu1 %1873, %v532_v31   ;;  %v358_v6 = vpop.f32.mrf.mxu1  ;;  %v706_v31 = vld [vmem:[#allocation3 + $0x8] sm:$0xff]  ;;  %v705_v32 = vld [vmem:[#allocation3] sm:$0xff] }
 0x151   :  { %266 = vperm.xlu0 %1876, %v1839_v25   ;;  %377 = vst.msk [vmem:[#allocation3 + $0x20] sm:$0xff] %vm226_vm5, %v358_v6  ;;  %v2283_v25 = vpop.permute.xlu1 %678  ;;  %v401_v34 = vpop.permute.xlu0 %400 }
 0x152   :  { %v1712_v7 = vpop.f32.mrf.mxu1  ;;  %vm402_vm0 = vcmp.eq.s32.totalorder %v2295_v39, %v401_v34  ;;  %vm680_vm15 = vcmp.eq.s32.totalorder %v2295_v39, %v2283_v25 }
 0x153   :  { %380 = vst.msk [vmem:[#allocation3 + $0x38] sm:$0xff] %vm226_vm5, %v1712_v7  ;;  %v2327_v7 = vld [vmem:[%s2486_s0 + $0x30] sm:$0xff] }
 0x154   :  { %1875 = vset.pattern.permute.xlu1 %v1911_v4  ;;  %v707_v29 = vld [vmem:[#allocation3 + $0x10] sm:$0xff] }
 0x155   :  { %683 = vperm.xlu1 %1875, %v671_v19   ;;  %281 = vperm.xlu0 %1876, %v264_v20   ;;  %v411_v21 = vpop.permute.xlu1 %410 }
 0x156   :  { %v710_v26 = vld [vmem:[#allocation3 + $0x28] sm:$0xff]  ;;  %v540_v40 = vpop.permute.xlu0 %539  ;;  %vm412_vm14 = vcmp.eq.s32.totalorder %v2295_v39, %v411_v21 }
 0x157   :  { %vm541_vm8 = vcmp.eq.s32.totalorder %v2295_v39, %v540_v40 }
 0x158   :  { %v709_v27 = vld [vmem:[#allocation3 + $0x20] sm:$0xff] }
 0x159   :  { %693 = vperm.xlu1 %1875, %v676_v45   ;;  %1879 = vset.pattern.permute.xlu0 %v1912_v5  ;;  %v550_v16 = vpop.permute.xlu1 %549  ;;  %v987_v45 = vsub.f32 1.0, %v985_v38 }
 0x15a   :  { %v712_v23 = vld [vmem:[#allocation3 + $0x38] sm:$0xff]  ;;  %vm551_vm7 = vcmp.eq.s32.totalorder %v2295_v39, %v550_v16 }
 0x15b   :  { %v988_v52 = vsel %vm986_vm2, %v987_v45, 0.0 }
 0x15c   :  { %v991_v2 = vadd.f32 %v990_v53, %v988_v52 }
 0x15d   :  { %1877 = vset.pattern.permute.xlu1 %v1915_v35 }
 0x15e   :  { %276 = vperm.xlu1 %1877, %v2174_v28   ;;  %v708_v28 = vld [vmem:[#allocation3 + $0x18] sm:$0xff] }
 0x162   :  { %271 = vperm.xlu1 %1877, %v259_v60   ;;  %v878_v60 = vld [vmem:[%s2490_s4] sm:$0x7] }
 0x163   :  { %1771 = vmatprep.subr.msk.mxu0 %vm137_vm3, %v878_v60 }
 0x164   :  { %1772 = vmatpush3.msk.msra.mxu0 %vm137_vm3, %v878_v60 }
 0x165   :  { %1774 = vmatmul.mubr.msk.f32.vlgmr.msra.gmra.mxu0 %vm124_vm4, %v2316_v0 }
 0x166   :  { %1878 = vset.pattern.permute.xlu1 %v1912_v5  ;;  %v368_v5 = vpop.f32.mrf.mxu1  ;;  %1776 = vmatprep.mubr.msk.f32.mxu0 %vm124_vm4, %v2327_v7 }
 0x167   :  { %379 = vst.msk [vmem:[#allocation3 + $0x30] sm:$0xff] %vm226_vm5, %v368_v5  ;;  %v995_v5 = vsel %vm994_vm12, %v991_v2, 0.0 }
 0x168   :  { %v1717_v8 = vpop.f32.mrf.mxu1 }
 0x169   :  { %517 = vst.msk [vmem:[#allocation3 + $0x48] sm:$0xff] %vm226_vm5, %v1717_v8  ;;  %v2335_v8 = vld [vmem:[%s2486_s0 + $0x38] sm:$0xff]  ;;  %s1918_s0 = smov 96  }
 0x16a   :  { %v497_v9 = vpop.f32.mrf.mxu1  ;;  %1777 = vmatmul.mubr.msk.f32.gmra.mxu0 %vm124_vm4, %v2335_v8 }
 0x16b   :  { %516 = vst.msk [vmem:[#allocation3 + $0x40] sm:$0xff] %vm226_vm5, %v497_v9  ;;  %v1592_v9 = vld [vmem:[%s2490_s4 + $0x4] sm:$0x7]  ;;  %1781 = vmatprep.mubr.msk.f32.mxu0 %vm124_vm4, %v2311_v63 }
 0x16c   :  { %v1720_v11 = vpop.f32.mrf.mxu1  ;;  %1779 = vmatprep.subr.msk.mxu0 %vm137_vm3, %v1592_v9 }
 0x16d   :  { %519 = vst.msk [vmem:[#allocation3 + $0x58] sm:$0xff] %vm226_vm5, %v1720_v11  ;;  %v2343_v11 = vld [vmem:[%s2490_s4 + $0xc] sm:$0x7]  ;;  %1780 = vmatpush3.msk.msra.mxu0 %vm137_vm3, %v1592_v9 }
 0x16e   :  { %v507_v13 = vpop.f32.mrf.mxu1  ;;  %v711_v24 = vld [vmem:[#allocation3 + $0x30] sm:$0xff]  ;;  %1782 = vmatmul.mubr.msk.f32.vlgmr.msra.gmra.mxu0 %vm124_vm4, %v2316_v0 }
 0x16f   :  { %518 = vst.msk [vmem:[#allocation3 + $0x50] sm:$0xff] %vm226_vm5, %v507_v13  ;;  %1784 = vmatprep.mubr.msk.f32.mxu0 %vm124_vm4, %v2327_v7 }
 0x170   :  { %v714_v18 = vld [vmem:[#allocation3 + $0x48] sm:$0xff] }
 0x172   :  { %v713_v22 = vld [vmem:[#allocation3 + $0x40] sm:$0xff]  ;;  %1785 = vmatmul.mubr.msk.f32.gmra.mxu0 %vm124_vm4, %v2335_v8 }
 0x173   :  { %1789 = vmatprep.mubr.msk.f32.mxu0 %vm124_vm4, %v2311_v63 }
 0x174   :  { %v716_v10 = vld [vmem:[#allocation3 + $0x58] sm:$0xff] }
 0x175   :  { %1738 = vmatpush3.msra.mxu1 %v716_v10 }
 0x176   :  { %1739 = vmatprep.subr.mxu1 %v1909_v1  ;;  %v715_v14 = vld [vmem:[#allocation3 + $0x50] sm:$0xff] }
 0x177   :  { %1740 = vmatpush3.msra.mxu1 %v715_v14 }
 0x178   :  { %1741 = vmatprep.subr.mxu1 %v1909_v1 }
 0x179   :  { %1742 = vmatpush3.msra.mxu1 %v714_v18 }
 0x17a   :  { %1743 = vmatprep.subr.mxu1 %v1909_v1 }
 0x17b   :  { %1744 = vmatpush3.msra.mxu1 %v713_v22 }
 0x17c   :  { %1745 = vmatprep.subr.mxu1 %v1909_v1 }
 0x17d   :  { %1746 = vmatpush3.msra.mxu1 %v712_v23 }
 0x17e   :  { %1747 = vmatprep.subr.mxu1 %v1909_v1 }
 0x17f   :  { %1748 = vmatpush3.msra.mxu1 %v711_v24  ;;  %v1598_v24 = vld [vmem:[%s2490_s4 + $0x8] sm:$0x7] }
 0x180   :  { %1749 = vmatprep.subr.mxu1 %v1909_v1  ;;  %1787 = vmatprep.subr.msk.mxu0 %vm137_vm3, %v1598_v24 }
 0x181   :  { %1750 = vmatpush3.msra.mxu1 %v710_v26  ;;  %1788 = vmatpush3.msk.msra.mxu0 %vm137_vm3, %v1598_v24 }
 0x182   :  { %1751 = vmatprep.subr.mxu1 %v1909_v1  ;;  %1803 = vmatprep.subr.mxu0 %v1909_v1 }
 0x183   :  { %1752 = vmatpush3.msra.mxu1 %v709_v27  ;;  %1790 = vmatmul.mubr.msk.f32.vlgmr.msra.gmra.mxu0 %vm124_vm4, %v2316_v0 }
 0x184   :  { %1753 = vmatprep.subr.mxu1 %v1909_v1  ;;  %1792 = vmatprep.mubr.msk.f32.mxu0 %vm124_vm4, %v2327_v7 }
 0x185   :  { %1754 = vmatpush3.msra.mxu1 %v708_v28 }
 0x186   :  { %1755 = vmatprep.subr.mxu1 %v1909_v1 }
 0x187   :  { %1756 = vmatpush3.msra.mxu1 %v707_v29  ;;  %1793 = vmatmul.mubr.msk.f32.gmra.mxu0 %vm124_vm4, %v2335_v8 }
 0x188   :  { %1757 = vmatprep.subr.mxu1 %v1909_v1  ;;  %1835 = vmatprep.mubr.msk.f32.mxu0 %vm1910_vm1, %v1909_v1  ;;  %vm702_vm1 = vcmask 1048320  }
 0x189   :  { %1758 = vmatpush3.msra.mxu1 %v706_v31 }
 0x18a   :  { %1759 = vmatprep.subr.mxu1 %v1909_v1 }
 0x18b   :  { %1760 = vmatpush3.msra.mxu1 %v705_v32 }
 0x18c   :  { %1795 = vmatprep.subr.msk.mxu1 %vm137_vm3, %v2343_v11 }
 0x1c2   :  { %v406_v37 = vpop.permute.xlu1 %405  ;;  %v555_v49 = vpop.permute.xlu0 %554 }
 0x1c3   :  { %v408_v20 = vsel %vm402_vm0, %v406_v37, 0.0  ;;  %v557_v54 = vsel %vm551_vm7, %v555_v49, 0.0  ;;  %vm563_vm7 = vcmask 785920  }
 0x1c6   :  { %v416_v19 = vpop.permute.xlu1 %415 }
 0x1c7   :  { %v418_v41 = vsel %vm412_vm14, %v416_v19, 0.0  ;;  %v689_v6 = vpop.permute.xlu0 %688 }
 0x1c8   :  { %v419_v47 = vadd.f32 %v418_v41, %v408_v20  ;;  %vm690_vm14 = vcmp.eq.s32.totalorder %v2295_v39, %v689_v6 }
 0x1ca   :  { %421 = vrot.lane.b32.xlu1 %v419_v47, %s1916_s21 }
 0x1cb   :  { %v545_v12 = vpop.permute.xlu1 %544 }
 0x1cc   :  { %v547_v58 = vsel %vm541_vm8, %v545_v12, 0.0  ;;  %v267_v22 = vpop.permute.xlu0 %266 }
 0x1cd   :  { %v558_v61 = vadd.f32 %v557_v54, %v547_v58  ;;  %vm268_vm2 = vcmp.eq.s32.totalorder %v2295_v39, %v267_v22 }
 0x1cf   :  { %560 = vrot.lane.b32.xlu0 %v558_v61, %s1917_s27 }
 0x1d0   :  { %v684_v3 = vpop.permute.xlu1 %683 }
 0x1d1   :  { %v686_v10 = vsel %vm680_vm15, %v684_v3, 0.0 }
 0x1d3   :  { %1008 = vrot.lane.b32.xlu0 %v995_v5, %s1913_s3 }
 0x1d4   :  { %v694_v13 = vpop.permute.xlu1 %693 }
 0x1d5   :  { %v696_v14 = vsel %vm690_vm14, %v694_v13, 0.0 }
 0x1d6   :  { %v697_v18 = vadd.f32 %v696_v14, %v686_v10 }
 0x1d7   :  { %1161 = vperm.xlu0 %1879, %v2208_v44   ;;  %v282_v44 = vpop.permute.xlu0 %281 }
 0x1d8   :  { %699 = vrot.lane.b32.xlu1 %v697_v18, %s1918_s0 }
 0x1d9   :  { %v277_v23 = vpop.permute.xlu1 %276 }
 0x1da   :  { %vm278_vm0 = vcmp.eq.s32.totalorder %v2295_v39, %v277_v23 }
 0x1db   :  { %1880 = vset.pattern.permute.xlu0 %v1914_v62  ;;  %v284_v26 = vsel %vm278_vm0, %v282_v44, 0.0 }
 0x1dc   :  { %1287 = vperm.xlu0 %1880, %v2205_v43   ;;  %1151 = vperm.xlu1 %1878, %v2203_v42   ;;  %v996_v42 = vadd.f32 %v2179_v30, %v2019_v15  ;;  %v1405_v43 = vadd.f32 %v2179_v30, %v2027_v17 }
 0x1dd   :  { %v272_v25 = vpop.permute.xlu1 %271 }
 0x1de   :  { %v274_v27 = vsel %vm268_vm2, %v272_v25, 0.0  ;;  %v1000_v29 = vfloor.f32 %v996_v42  ;;  %v1409_v31 = vfloor.f32 %v1405_v43  ;;  %vm997_vm8 = vcmp.gt.f32.partialorder %v996_v42, -1.0 }
 0x1df   :  { %v285_v28 = vadd.f32 %v284_v26, %v274_v27  ;;  %vm998_vm9 = vcmp.lt.f32.partialorder %v996_v42, 32.0  ;;  %vm1406_vm12 = vcmp.gt.f32.partialorder %v1405_v43, -1.0  ;;  %vm1407_vm15 = vcmp.lt.f32.partialorder %v1405_v43, 32.0 }
 0x1e0   :  { %v1846_v16 = vtrunc.f32 %v1000_v29  ;;  %v1852_v34 = vtrunc.f32 %v1409_v31  ;;  %vm2403_vm10 = vmand %vm997_vm8, %vm998_vm9 }
 0x1e1   :  { %286 = vst.msk [vmem:[#allocation2] sm:$0xff] %vm226_vm5, %v285_v28  ;;  %vm1408_vm14 = vmand %vm1406_vm12, %vm1407_vm15 }
 0x1e2   :  { %v1847_v37 = vcvt.f32.s32 %v1846_v16  ;;  %v1853_v30 = vcvt.f32.s32 %v1852_v34 }
 0x1e4   :  { %v1012_v38 = vadd.s32 1, %v1847_v37  ;;  %v1417_v50 = vadd.s32 1, %v1853_v30  ;;  %vm1412_vm0 = vcmp.ge.s32.totalorder %v1853_v30, 0  ;;  %vm1003_vm9 = vcmp.ge.s32.totalorder %v1847_v37, 0 }
 0x1e5   :  { %vm1413_vm2 = vmand %vm1412_vm0, %vm1408_vm14 }
 0x1e6   :  { %vm1013_vm11 = vcmp.le.s32.totalorder %v1012_v38, 31  ;;  %vm1418_vm8 = vcmp.le.s32.totalorder %v1417_v50, 31 }
 0x1e7   :  { %vm1014_vm13 = vmand %vm1013_vm11, %vm2403_vm10 }
 0x1e8   :  { %vm1004_vm11 = vmand %vm1003_vm9, %vm2403_vm10 }
 0x225   :  { %v1775_v12 = vpop.f32.mrf.mxu0 }
 0x226   :  { %981 = vst.msk [vmem:[#allocation3 + $0x88] sm:$0xff] %vm226_vm5, %v1775_v12 }
 0x227   :  { %v960_v52 = vpop.f32.mrf.mxu0 }
 0x228   :  { %980 = vst.msk [vmem:[#allocation3 + $0x80] sm:$0xff] %vm226_vm5, %v960_v52 }
 0x22a   :  { %v1778_v53 = vpop.f32.mrf.mxu0 }
 0x22b   :  { %983 = vst.msk [vmem:[#allocation3 + $0x98] sm:$0xff] %vm226_vm5, %v1778_v53 }
 0x22c   :  { %v970_v54 = vpop.f32.mrf.mxu0 }
 0x22d   :  { %982 = vst.msk [vmem:[#allocation3 + $0x90] sm:$0xff] %vm226_vm5, %v970_v54  ;;  %v1450_v12 = vld [vmem:[#allocation3 + $0x88] sm:$0xff] }
 0x22e   :  { %v1783_v58 = vpop.f32.mrf.mxu0 }
 0x22f   :  { %1130 = vst.msk [vmem:[#allocation3 + $0xa8] sm:$0xff] %vm226_vm5, %v1783_v58  ;;  %v1449_v52 = vld [vmem:[#allocation3 + $0x80] sm:$0xff] }
 0x23c   :  { %v422_v21 = vpop.permute.xlu1 %421 }
 0x23d   :  { %425 = vst.msk [vmem:[#allocation2] sm:$0xff] %vm424_vm6, %v422_v21 }
 0x241   :  { %v561_v32 = vpop.permute.xlu0 %560 }
 0x242   :  { %564 = vst.msk [vmem:[#allocation2] sm:$0xff] %vm563_vm7, %v561_v32 }
 0x245   :  { %v1009_v36 = vpop.permute.xlu0 %1008 }
 0x246   :  { %v1285_v15 = vmul.f32 %v1284_v51, %v1009_v36  ;;  %v1144_v17 = vmul.f32 %v2249_v55, %v1009_v36  ;;  %v1149_v19 = vmul.f32 %v1148_v57, %v1009_v36  ;;  %v1001_v51 = vsub.f32 %v996_v42, %v1000_v29 }
 0x247   :  { %v1280_v55 = vmul.f32 %v2263_v59, %v1009_v36  ;;  %v1410_v57 = vsub.f32 %v1405_v43, %v1409_v31 }
 0x248   :  { %1302 = vperm.xlu0 %1880, %v1285_v15   ;;  %1156 = vperm.xlu1 %1878, %v1144_v17   ;;  %v1015_v56 = vsel %vm1014_vm13, %v1001_v51, 0.0  ;;  %v1005_v47 = vsub.f32 1.0, %v1001_v51  ;;  %v2455_v15 = vld [vmem:[%s2491_s5] ss:$0 sm:$0xff]  ;;  %s1919_s5 = smov [#allocation4]  }
 0x249   :  { %v1016_v20 = vmul.f32 %v1015_v56, %v1009_v36  ;;  %s1542_s15 = sshll.u32 %s1919_s5, 4  ;;  %s1543_s15 = int_to_ptr.vmem [resolvable:$true] %s1542_s15 }
 0x24a   :  { %v700_v40 = vpop.permute.xlu1 %699  ;;  %v1006_v49 = vsel %vm1004_vm11, %v1005_v47, 0.0  ;;  %v1452_v47 = vld [vmem:[#allocation3 + $0x98] sm:$0xff]  ;;  %s1887_s1 = scalar_lea.vmem %s1543_s15, 256  ;;  %p1892_p1 = scmp.lt.s32.totalorder %s1543_s15, %s1543_s15 }
 0x24b   :  { %703 = vst.msk [vmem:[#allocation2] sm:$0xff] %vm702_vm1, %v700_v40  ;;  %p1888_p0 = scmp.ne.s32.totalorder %s1543_s15, %s1887_s1  ;;  %p1893_p2 = scmp.lt.s32.totalorder %s1887_s1, %s1887_s1 }
 0x24c   :  { %1883 = vset.pattern.permute.xlu0 %v1911_v4  ;;  %1166 = vperm.xlu1 %1878, %v1149_v19  }
 0x24d   :  { %1433 = vperm.xlu0 %1883, %v1417_v50   ;;  %p1894_p3 = por %p1893_p2, %p1892_p1 }
 0x24f   :  { %p1895_p4 = pnand %p1894_p3, %p1888_p0 }
 0x250   :  { %1881 = vset.pattern.permute.xlu1 %v1914_v62  ;;  %v1414_v62 = vsub.f32 1.0, %v1410_v57 }
 0x251   :  { %1884 = vset.pattern.permute.xlu0 %v1915_v35  ;;  %1297 = vperm.xlu1 %1881, %v2216_v46  }
 0x252   :  { %1018 = vperm.xlu0 %1884, %v1847_v37   ;;  %v704_v33 = vld [vmem:[#allocation2] sm:$0xff]  ;;  %v1415_v46 = vsel %vm1413_vm2, %v1414_v62, 0.0  ;;  %v1162_v5 = vpop.permute.xlu0 %1161 }
 0x253   :  { %1762 = vmatmul.mubr.f32.vlgmr.msra.gmra.mxu1 %v704_v33  ;;  %v1416_v59 = vmul.f32 %v1415_v46, %v1009_v36 }
 0x254   :  { %1796 = vmatpush3.msk.msra.mxu1 %vm137_vm3, %v2343_v11  ;;  %1797 = vmatprep.mubr.msk.f32.mxu1 %vm124_vm4, %v2311_v63  ;;  %vm1419_vm3 = vmand %vm1418_vm8, %vm1408_vm14 }
 0x255   :  { %1292 = vperm.xlu1 %1881, %v1280_v55   ;;  %v1420_v41 = vsel %vm1419_vm3, %v1410_v57, 0.0 }
 0x256   :  { %1033 = vperm.xlu0 %1884, %v1016_v20   ;;  %v1421_v45 = vmul.f32 %v1420_v41, %v1009_v36  ;;  %v1454_v41 = vld [vmem:[#allocation3 + $0xa8] sm:$0xff] }
 0x257   :  { %1798 = vmatmul.mubr.msk.f32.vlgmr.msra.gmra.mxu1 %vm124_vm4, %v2316_v0  ;;  %v1152_v6 = vpop.permute.xlu1 %1151  ;;  %v1288_v10 = vpop.permute.xlu0 %1287 }
 0x258   :  { %1800 = vmatprep.mubr.msk.f32.mxu1 %vm124_vm4, %v2327_v7  ;;  %vm1153_vm10 = vcmp.eq.s32.totalorder %v2295_v39, %v1152_v6  ;;  %vm1289_vm12 = vcmp.eq.s32.totalorder %v2295_v39, %v1288_v10 }
 0x259   :  { %1882 = vset.pattern.permute.xlu1 %v1911_v4 }
 0x25a   :  { %1423 = vperm.xlu1 %1882, %v1853_v30   ;;  %1886 = vset.pattern.permute.xlu0 %v1911_v4  ;;  %v1011_v4 = vmul.f32 %v1009_v36, %v1006_v49 }
 0x25b   :  { %1801 = vmatmul.mubr.msk.f32.gmra.mxu1 %vm124_vm4, %v2335_v8  ;;  %vm1163_vm4 = vcmp.eq.s32.totalorder %v2295_v39, %v1162_v5 }
 0x25e   :  { %1428 = vperm.xlu1 %1882, %v1416_v59  }
 0x262   :  { %1438 = vperm.xlu1 %1882, %v1421_v45  }
 0x266   :  { %1885 = vset.pattern.permute.xlu1 %v1915_v35  ;;  %v1110_v35 = vpop.f32.mrf.mxu0 }
 0x267   :  { %1028 = vperm.xlu1 %1885, %v1012_v38   ;;  %1129 = vst.msk [vmem:[#allocation3 + $0xa0] sm:$0xff] %vm226_vm5, %v1110_v35 }
 0x268   :  { %v1786_v60 = vpop.f32.mrf.mxu0 }
 0x269   :  { %1132 = vst.msk [vmem:[#allocation3 + $0xb8] sm:$0xff] %vm226_vm5, %v1786_v60 }
 0x26a   :  { %v1120_v61 = vpop.f32.mrf.mxu0 }
 0x26b   :  { %1023 = vperm.xlu1 %1885, %v1011_v4   ;;  %1131 = vst.msk [vmem:[#allocation3 + $0xb0] sm:$0xff] %vm226_vm5, %v1120_v61  ;;  %v1451_v4 = vld [vmem:[#allocation3 + $0x90] sm:$0xff] }
 0x26c   :  { %v1791_v63 = vpop.f32.mrf.mxu0 }
 0x26d   :  { %1266 = vst.msk [vmem:[#allocation3 + $0xc8] sm:$0xff] %vm226_vm5, %v1791_v63 }
 0x26e   :  { %v1246_v0 = vpop.f32.mrf.mxu0  ;;  %v1453_v45 = vld [vmem:[#allocation3 + $0xa0] sm:$0xff] }
 0x26f   :  { %1265 = vst.msk [vmem:[#allocation3 + $0xc0] sm:$0xff] %vm226_vm5, %v1246_v0 }
 0x270   :  { %v1794_v2 = vpop.f32.mrf.mxu0  ;;  %v1456_v46 = vld [vmem:[#allocation3 + $0xb8] sm:$0xff] }
 0x271   :  { %1268 = vst.msk [vmem:[#allocation3 + $0xd8] sm:$0xff] %vm226_vm5, %v1794_v2 }
 0x272   :  { %v1256_v3 = vpop.f32.mrf.mxu0  ;;  %v1455_v59 = vld [vmem:[#allocation3 + $0xb0] sm:$0xff] }
 0x273   :  { %1267 = vst.msk [vmem:[#allocation3 + $0xd0] sm:$0xff] %vm226_vm5, %v1256_v3 }
 0x274   :  { %v1458_v20 = vld [vmem:[#allocation3 + $0xc8] sm:$0xff] }
 0x276   :  { %v1457_v62 = vld [vmem:[#allocation3 + $0xc0] sm:$0xff] }
 0x278   :  { %v1460_v56 = vld [vmem:[#allocation3 + $0xd8] sm:$0xff] }
 0x27a   :  { %v1459_v57 = vld [vmem:[#allocation3 + $0xd0] sm:$0xff] }
 0x2c3   :  { %v1157_v7 = vpop.permute.xlu1 %1156  ;;  %v1303_v18 = vpop.permute.xlu0 %1302 }
 0x2c4   :  { %v1159_v9 = vsel %vm1153_vm10, %v1157_v7, 0.0 }
 0x2c7   :  { %v1167_v8 = vpop.permute.xlu1 %1166 }
 0x2c8   :  { %v1169_v11 = vsel %vm1163_vm4, %v1167_v8, 0.0  ;;  %v1434_v27 = vpop.permute.xlu0 %1433 }
 0x2c9   :  { %v1170_v13 = vadd.f32 %v1169_v11, %v1159_v9  ;;  %vm1435_vm15 = vcmp.eq.s32.totalorder %v2295_v39, %v1434_v27 }
 0x2cb   :  { %1172 = vrot.lane.b32.xlu1 %v1170_v13, %s1916_s21 }
 0x2cc   :  { %v1298_v14 = vpop.permute.xlu1 %1297 }
 0x2cd   :  { %vm1299_vm13 = vcmp.eq.s32.totalorder %v2295_v39, %v1298_v14  ;;  %v1019_v29 = vpop.permute.xlu0 %1018 }
 0x2ce   :  { %v1305_v23 = vsel %vm1299_vm13, %v1303_v18, 0.0  ;;  %vm1020_vm2 = vcmp.eq.s32.totalorder %v2295_v39, %v1019_v29 }
 0x2d0   :  { %v1293_v22 = vpop.permute.xlu1 %1292 }
 0x2d1   :  { %v1295_v24 = vsel %vm1289_vm12, %v1293_v22, 0.0  ;;  %v1034_v32 = vpop.permute.xlu0 %1033 }
 0x2d2   :  { %v1306_v44 = vadd.f32 %v1305_v23, %v1295_v24 }
 0x2d4   :  { %1308 = vrot.lane.b32.xlu0 %v1306_v44, %s1917_s27 }
 0x2d5   :  { %v1424_v25 = vpop.permute.xlu1 %1423 }
 0x2d6   :  { %vm1425_vm14 = vcmp.eq.s32.totalorder %v2295_v39, %v1424_v25 }
 0x2d9   :  { %v1429_v26 = vpop.permute.xlu1 %1428 }
 0x2da   :  { %v1431_v42 = vsel %vm1425_vm14, %v1429_v26, 0.0 }
 0x2dd   :  { %v1439_v28 = vpop.permute.xlu1 %1438 }
 0x2de   :  { %v1441_v43 = vsel %vm1435_vm15, %v1439_v28, 0.0 }
 0x2df   :  { %v1442_v21 = vadd.f32 %v1441_v43, %v1431_v42 }
 0x2e1   :  { %1444 = vrot.lane.b32.xlu1 %v1442_v21, %s1918_s0 }
 0x2e2   :  { %v1029_v31 = vpop.permute.xlu1 %1028 }
 0x2e3   :  { %vm1030_vm0 = vcmp.eq.s32.totalorder %v2295_v39, %v1029_v31 }
 0x2e4   :  { %v1036_v34 = vsel %vm1030_vm0, %v1034_v32, 0.0 }
 0x2e6   :  { %v1024_v16 = vpop.permute.xlu1 %1023 }
 0x2e7   :  { %v1026_v36 = vsel %vm1020_vm2, %v1024_v16, 0.0 }
 0x2e8   :  { %v1037_v37 = vadd.f32 %v1036_v34, %v1026_v36 }
 0x2ea   :  { %1039 = vst.msk [vmem:[#allocation2 + $0x8] sm:$0xff] %vm226_vm5, %v1037_v37 }
 0x313   :  { %v793_v17 = vpop.f32.mrf.mxu1 }
 0x314   :  { %v794_v30 = vadd.f32 %v2455_v15, %v793_v17 }
 0x315   :  { %v1763_v38 = vpop.f32.mrf.mxu1 }
 0x316   :  { %797 = vst.msk [vmem:[#allocation4] sm:$0xff] %vm226_vm5, %v794_v30 }
 0x317   :  { %v1799_v40 = vpop.f32.mrf.mxu1 }
 0x318   :  { %1402 = vst.msk [vmem:[#allocation3 + $0xe8] sm:$0xff] %vm226_vm5, %v1799_v40 }
 0x319   :  { %v1382_v39 = vpop.f32.mrf.mxu1 }
 0x31a   :  { %1401 = vst.msk [vmem:[#allocation3 + $0xe0] sm:$0xff] %vm226_vm5, %v1382_v39 }
 0x31b   :  { %v1802_v19 = vpop.f32.mrf.mxu1 }
 0x31c   :  { %1404 = vst.msk [vmem:[#allocation3 + $0xf8] sm:$0xff] %vm226_vm5, %v1802_v19 }
 0x31d   :  { %v1392_v50 = vpop.f32.mrf.mxu1 }
 0x31e   :  { %1403 = vst.msk [vmem:[#allocation3 + $0xf0] sm:$0xff] %vm226_vm5, %v1392_v50 }
 0x31f   :  { %v1462_v33 = vld [vmem:[#allocation3 + $0xe8] sm:$0xff] }
 0x321   :  { %v1461_v55 = vld [vmem:[#allocation3 + $0xe0] sm:$0xff] }
 0x323   :  { %v1464_v48 = vld [vmem:[#allocation3 + $0xf8] sm:$0xff] }
 0x324   :  { %1804 = vmatpush3.msra.mxu0 %v1464_v48 }
 0x325   :  { %1805 = vmatprep.subr.mxu0 %v1909_v1  ;;  %v1463_v51 = vld [vmem:[#allocation3 + $0xf0] sm:$0xff] }
 0x326   :  { %1806 = vmatpush3.msra.mxu0 %v1463_v51 }
 0x327   :  { %1807 = vmatprep.subr.mxu0 %v1909_v1 }
 0x328   :  { %1808 = vmatpush3.msra.mxu0 %v1462_v33 }
 0x329   :  { %1809 = vmatprep.subr.mxu0 %v1909_v1 }
 0x32a   :  { %1810 = vmatpush3.msra.mxu0 %v1461_v55 }
 0x32b   :  { %1811 = vmatprep.subr.mxu0 %v1909_v1 }
 0x32c   :  { %1812 = vmatpush3.msra.mxu0 %v1460_v56 }
 0x32d   :  { %1813 = vmatprep.subr.mxu0 %v1909_v1 }
 0x32e   :  { %1814 = vmatpush3.msra.mxu0 %v1459_v57 }
 0x32f   :  { %1815 = vmatprep.subr.mxu0 %v1909_v1 }
 0x330   :  { %1816 = vmatpush3.msra.mxu0 %v1458_v20 }
 0x331   :  { %1817 = vmatprep.subr.mxu0 %v1909_v1 }
 0x332   :  { %1818 = vmatpush3.msra.mxu0 %v1457_v62 }
 0x333   :  { %1819 = vmatprep.subr.mxu0 %v1909_v1 }
 0x334   :  { %1820 = vmatpush3.msra.mxu0 %v1456_v46 }
 0x335   :  { %1821 = vmatprep.subr.mxu0 %v1909_v1 }
 0x336   :  { %1822 = vmatpush3.msra.mxu0 %v1455_v59 }
 0x337   :  { %1823 = vmatprep.subr.mxu0 %v1909_v1 }
 0x338   :  { %1824 = vmatpush3.msra.mxu0 %v1454_v41 }
 0x339   :  { %1825 = vmatprep.subr.mxu0 %v1909_v1 }
 0x33a   :  { %1826 = vmatpush3.msra.mxu0 %v1453_v45 }
 0x33b   :  { %1827 = vmatprep.subr.mxu0 %v1909_v1 }
 0x33c   :  { %1828 = vmatpush3.msra.mxu0 %v1452_v47 }
 0x33d   :  { %v1173_v49 = vpop.permute.xlu1 %1172  ;;  %1829 = vmatprep.subr.mxu0 %v1909_v1 }
 0x33e   :  { %1175 = vst.msk [vmem:[#allocation2 + $0x8] sm:$0xff] %vm424_vm6, %v1173_v49  ;;  %1830 = vmatpush3.msra.mxu0 %v1451_v4 }
 0x33f   :  { %1831 = vmatprep.subr.mxu0 %v1909_v1 }
 0x340   :  { %1832 = vmatpush3.msra.mxu0 %v1450_v12 }
 0x341   :  { %1833 = vmatprep.subr.mxu0 %v1909_v1 }
 0x342   :  { %1834 = vmatpush3.msra.mxu0 %v1449_v52 }
 0x346   :  { %v1309_v53 = vpop.permute.xlu0 %1308 }
 0x347   :  { %1311 = vst.msk [vmem:[#allocation2 + $0x8] sm:$0xff] %vm563_vm7, %v1309_v53 }
 0x353   :  { %v1445_v54 = vpop.permute.xlu1 %1444 }
 0x354   :  { %1447 = vst.msk [vmem:[#allocation2 + $0x8] sm:$0xff] %vm702_vm1, %v1445_v54 }
 0x35b   :  { %v1448_v58 = vld [vmem:[#allocation2 + $0x8] sm:$0xff] }
 0x35c   :  { %1836 = vmatmul.mubr.f32.vlgmr.msra.gmra.mxu0 %v1448_v58 }
 0x41c   :  { %v1531_v35 = vpop.f32.mrf.mxu0 }
 0x41d   :  { %v1532_v60 = vadd.f32 %v2455_v15, %v1531_v35 }
 0x41e   :  { %v1837_v61 = vpop.f32.mrf.mxu0 }
 0x41f   :  { %1536 = vst.msk [vmem:[#allocation4 + $0x8] sm:$0xff] %vm226_vm5, %v1532_v60 }
 0x420   :  { %1898 = shalt.err (!%p1895_p4)
}
 0x421   :  { %s1920_s16 = smov 128   ;;  %s1921_s3 = smov 8  }
 0x422   :  { %1548 = dma.vmem_to_hbm [thread:$0]  %s1543_s15, 256, %s2492_s6, [#allocation5], %s1920_s16, %s1920_s16, %s1921_s3  }
 0x423   :  { %1907 = dma.done.wait [#allocation5], 256  }
 0x424   :  { %1908 = vsyncadd [#allocation5], 4294967040 }
 0x425   :  { %1552 = vsyncpa [#allocation5], 1 }

</bundles_post_ra>
